<compile_context>
chip_gen: v6e
topology: v6e:2x2x1
jax: 0.10.0
libtpu: 0.0.40
codegen_flags: <defaults>
</compile_context>

<pallas_src>
import functools

import jax
import jax.numpy as jnp
import numpy as np
from jax.experimental import pallas as pl
from jax.experimental.pallas import tpu as pltpu


def _din_attention_kernel(past_ref, cand_ref, mask_ref, ts_ref, dscale_ref,
                          wq_ref, bq_ref, wkv_ref, bkv_ref,
                          wiq_ref, wik_ref, wiqk_ref, bi_ref,
                          att_ref, inter_ref,
                          *, scale, time_decay_factor, matmul_dtype):
    TB, S, D = past_ref.shape

    def mm(a, w_ref):
        # bf16 (or f32) MXU inputs, f32 accumulation.
        return jnp.dot(a.astype(matmul_dtype), w_ref[...].astype(matmul_dtype),
                       preferred_element_type=jnp.float32)

    cand = cand_ref[...]          # (TB, D) f32
    mask = mask_ref[...]          # (TB, S)
    ts = ts_ref[...]              # (TB, S)
    dscale = dscale_ref[...]      # (TB, S) folded-dropout keep-count scale

    # Projections. K/V fused into one (TB*S, D) @ (D, 2D) matmul.
    xf = past_ref[...].reshape(TB * S, D)
    q = mm(cand, wq_ref) + bq_ref[...]                     # (TB, D)
    kv = mm(xf, wkv_ref) + bkv_ref[...]                    # (TB*S, 2D)
    k = kv[:, :D].reshape(TB, S, D)
    v = kv[:, D:].reshape(TB, S, D)

    # Interaction branch (means over S include padded positions, matching torch).
    k_mean = jnp.mean(k, axis=1)                           # (TB, D)
    inter = (mm(q, wiq_ref) + mm(k_mean, wik_ref) + mm(q * k_mean, wiqk_ref)
             + bi_ref[...])                                # (TB, D)

    # Rank-1 attention: one score row per batch element.
    scores = jnp.sum(q[:, None, :] * k, axis=-1) * (1.0 / scale)   # (TB, S)
    decay = jnp.exp(-time_decay_factor * ts)
    scores = scores * decay
    # Mask after the decay multiply: identical to torch's mask-then-decay
    # whenever decay > 0, and avoids -inf * 0 = NaN when decay underflows.
    scores = jnp.where(mask == 0.0, -jnp.inf, scores)

    m = jnp.max(scores, axis=-1, keepdims=True)
    e = jnp.exp(scores - m)
    denom = jnp.sum(e, axis=-1, keepdims=True)
    w = e * pl.reciprocal(denom, approx=True)              # softmax (divide on EUP)
    w = w * dscale                                         # folded inverted dropout

    att_ref[...] = jnp.sum(w[:, :, None] * v, axis=1) + cand   # (TB, D)
    inter_ref[...] = inter                                      # (TB, D)


def _pick_batch_tile(B, S, D, *, target_rows=1024, vmem_budget_bytes=24 * 1024 * 1024):
    """TB*S ~ target MXU rows, TB 8-aligned, bounded by a conservative VMEM model."""
    # f32 per-batch-element estimate: past tile (double-buffered), kv result, k/v,
    # score temporaries, plus (TB,D)/(TB,S) vectors.
    per_elem = 4 * (8 * S * D + 16 * D + 8 * S)
    # Double-buffered weights + biases (worst case f32).
    fixed = 8 * (6 * D * D + 8 * D)
    tb_budget = max(8, (vmem_budget_bytes - fixed) // max(per_elem, 1))
    tb = int(min(max(64, -(-target_rows // max(S, 1))), tb_budget))
    if B <= tb:
        return B, B                      # whole batch in one step (block == full dims)
    tb = max(8, (tb // 8) * 8)           # sublane alignment for the 2-D blocks
    return tb, -(-B // tb) * tb          # (TB, padded B)


def enhanced_multi_head_din_attention(past, cand, mask, ts, params, *,
                                      num_heads=4, time_decay_factor=0.01,
                                      dropout_p=0.1, dropout_key=None,
                                      matmul_dtype=jnp.bfloat16):
    B, S, D = past.shape
    scale = float((D // num_heads) ** 0.5)

    # F.dropout (default training=True) on the (S,S) attention weights: since all
    # S query rows are identical, the subsequent row-mean reduces the inverted
    # dropout mask to a per-key Binomial(S, 1-p) keep count.
    # TODO(synk): exact reproduction of torch's dropout RNG stream is not possible.
    if dropout_p > 0.0:
        if dropout_key is None:
            dropout_key = jax.random.PRNGKey(1234)
        keep = jax.random.binomial(dropout_key, S, 1.0 - dropout_p, shape=(B, S))
        dscale = keep.astype(jnp.float32) / (S * (1.0 - dropout_p))
    else:
        dscale = jnp.ones((B, S), jnp.float32)

    # Fold the interaction weight:
    #   [q, k, q-k, q*k] @ Wi = q@(W1+W3) + k@(W2-W3) + (q*k)@W4
    wi = params["wi"]
    wiq = (wi[:D] + wi[2 * D:3 * D]).astype(matmul_dtype)
    wik = (wi[D:2 * D] - wi[2 * D:3 * D]).astype(matmul_dtype)
    wiqk = wi[3 * D:].astype(matmul_dtype)
    # Fused K|V projection.
    wkv = jnp.concatenate([params["wk"], params["wv"]], axis=1).astype(matmul_dtype)
    bkv = jnp.concatenate([params["bk"], params["bv"]], axis=1)
    wq = params["wq"].astype(matmul_dtype)

    TB, B_pad = _pick_batch_tile(B, S, D)
    past_mm = past.astype(matmul_dtype)        # halves the dominant HBM tile when bf16
    cand_p, mask_p, ts_p, dscale_p = cand, mask, ts, dscale
    if B_pad != B:
        pad = B_pad - B
        past_mm = jnp.pad(past_mm, ((0, pad), (0, 0), (0, 0)))
        cand_p = jnp.pad(cand_p, ((0, pad), (0, 0)))
        # Pad mask/dscale with ones so padded rows stay finite; outputs are sliced off.
        mask_p = jnp.pad(mask_p, ((0, pad), (0, 0)), constant_values=1.0)
        ts_p = jnp.pad(ts_p, ((0, pad), (0, 0)))
        dscale_p = jnp.pad(dscale_p, ((0, pad), (0, 0)), constant_values=1.0)

    w_isize = jnp.dtype(matmul_dtype).itemsize
    cost = pl.CostEstimate(
        flops=int(2 * B_pad * D * D + 4 * B_pad * S * D * D
                  + 6 * B_pad * D * D + 4 * B_pad * S * D),
        transcendentals=int(2 * B_pad * S + B_pad),
        bytes_accessed=int(B_pad * S * D * w_isize + B_pad * (D + 3 * S) * 4
                           + 6 * D * D * w_isize + 5 * D * 4 + 2 * B_pad * D * 4))

    kernel = functools.partial(_din_attention_kernel, scale=scale,
                               time_decay_factor=time_decay_factor,
                               matmul_dtype=matmul_dtype)

    def build_call(single_buffer_weights):
        w_kwargs = {"pipeline_mode": pl.Buffered(1)} if single_buffer_weights else {}

        def wspec(shape):
            return pl.BlockSpec(shape, lambda b, _s=shape: (0,) * len(_s), **w_kwargs)

        grid_spec = pltpu.PrefetchScalarGridSpec(
            num_scalar_prefetch=0,
            grid=(B_pad // TB,),
            in_specs=[
                pl.BlockSpec((TB, S, D), lambda b: (b, 0, 0)),   # past_interactions
                pl.BlockSpec((TB, D), lambda b: (b, 0)),         # candidate
                pl.BlockSpec((TB, S), lambda b: (b, 0)),         # mask
                pl.BlockSpec((TB, S), lambda b: (b, 0)),         # timestamps
                pl.BlockSpec((TB, S), lambda b: (b, 0)),         # dropout scale
                wspec((D, D)), wspec((1, D)),                    # Wq, bq
                wspec((D, 2 * D)), wspec((1, 2 * D)),            # Wkv, bkv
                wspec((D, D)), wspec((D, D)), wspec((D, D)),     # Wi_q, Wi_k, Wi_qk
                wspec((1, D)),                                   # bi
            ],
            out_specs=(pl.BlockSpec((TB, D), lambda b: (b, 0)),
                       pl.BlockSpec((TB, D), lambda b: (b, 0))),
        )
        return pl.pallas_call(
            kernel,
            grid_spec=grid_spec,
            out_shape=(jax.ShapeDtypeStruct((B_pad, D), jnp.float32),
                       jax.ShapeDtypeStruct((B_pad, D), jnp.float32)),
            compiler_params=pltpu.CompilerParams(
                dimension_semantics=("parallel",),
                vmem_limit_bytes=32 * 1024 * 1024),
            cost_estimate=cost,
        )

    args = (past_mm, cand_p, mask_p, ts_p, dscale_p,
            wq, params["bq"], wkv, bkv, wiq, wik, wiqk, params["bi"])
    try:
        # Grid-invariant weights only need a single VMEM buffer.
        att, inter = build_call(True)(*args)
    except Exception:
        # Fallback for Pallas builds that reject Buffered(1) on top-level specs.
        att, inter = build_call(False)(*args)

    return jnp.concatenate([att[:B], inter[:B]], axis=-1)


def init_params(key, input_dim):
    """Deterministic nn.Linear-style init (U(-1/sqrt(fan_in), 1/sqrt(fan_in)))."""
    def linear(k, fan_in, fan_out):
        kw, kb = jax.random.split(k)
        bound = 1.0 / np.sqrt(fan_in)
        w = jax.random.uniform(kw, (fan_in, fan_out), jnp.float32, -bound, bound)
        b = jax.random.uniform(kb, (1, fan_out), jnp.float32, -bound, bound)
        return w, b

    kq, kk, kv, ki = jax.random.split(key, 4)
    wq, bq = linear(kq, input_dim, input_dim)
    wk, bk = linear(kk, input_dim, input_dim)
    wv, bv = linear(kv, input_dim, input_dim)
    wi, bi = linear(ki, 4 * input_dim, input_dim)
    return dict(wq=wq, bq=bq, wk=wk, bk=bk, wv=wv, bv=bv, wi=wi, bi=bi)


def reference_no_dropout(past, cand, mask, ts, params, *, num_heads=4, time_decay_factor=0.01):
    """Pure-JAX replica of the torch forward with dropout disabled (sanity check)."""
    B, S, D = past.shape
    scale = (D // num_heads) ** 0.5
    q = cand @ params["wq"] + params["bq"]
    qb = jnp.broadcast_to(q[:, None, :], (B, S, D))
    k = past @ params["wk"] + params["bk"]
    v = past @ params["wv"] + params["bv"]
    feat = jnp.concatenate([qb, k, qb - k, qb * k], axis=-1)
    inter = feat @ params["wi"] + params["bi"]
    scores = jnp.einsum("bqd,bkd->bqk", qb, k) / scale
    scores = jnp.where(mask[:, None, :] == 0.0, -jnp.inf, scores)
    decay = jnp.exp(-time_decay_factor * ts)
    scores = scores * decay[:, None, :]
    w = jax.nn.softmax(scores, axis=-1)
    att = jnp.einsum("bqk,bkd->bqd", w, v)
    att_mean = att.mean(axis=1) + cand
    return jnp.concatenate([att_mean, inter.mean(axis=1)], axis=-1)


if __name__ == "__main__":
    B, S, D, H = 2, 8, 32, 4

    key = jax.random.PRNGKey(0)
    kp, k1, k2, k3, kd = jax.random.split(key, 5)

    params = init_params(kp, D)
    past_interactions = jax.random.normal(k1, (B, S, D), jnp.float32)
    candidate_embedding = jax.random.normal(k2, (B, D), jnp.float32)
    lengths = jnp.array([S, 5], dtype=jnp.int32)
    past_mask = (jnp.arange(S)[None, :] < lengths[:, None]).astype(jnp.float32)
    past_timestamps = jax.random.uniform(k3, (B, S), jnp.float32, 0.0, 50.0)

    ref = reference_no_dropout(
        past_interactions, candidate_embedding, past_mask, past_timestamps, params,
        num_heads=H)

    # Correctness check, f32 matmul path, dropout disabled.
    out_f32 = enhanced_multi_head_din_attention(
        past_interactions, candidate_embedding, past_mask, past_timestamps, params,
        num_heads=H, dropout_p=0.0, matmul_dtype=jnp.float32)
    out_f32 = jax.block_until_ready(out_f32)
    np.testing.assert_allclose(np.asarray(out_f32), np.asarray(ref), rtol=1e-2, atol=1e-2)

    # bf16 MXU path (the performance configuration), dropout disabled.
    out_bf16 = enhanced_multi_head_din_attention(
        past_interactions, candidate_embedding, past_mask, past_timestamps, params,
        num_heads=H, dropout_p=0.0, matmul_dtype=jnp.bfloat16)
    out_bf16 = jax.block_until_ready(out_bf16)
    np.testing.assert_allclose(np.asarray(out_bf16), np.asarray(ref), rtol=5e-2, atol=5e-2)

    # Actual module semantics: F.dropout(p=0.1) with its default training=True.
    out = enhanced_multi_head_din_attention(
        past_interactions, candidate_embedding, past_mask, past_timestamps, params,
        num_heads=H, dropout_p=0.1, dropout_key=kd)
    out = jax.block_until_ready(out)
    assert out.shape == (B, 2 * D)
    assert bool(jnp.all(jnp.isfinite(out)))
    print("KERNEL_OK")
</pallas_src>

<mosaic_0001>
module attributes {stable_mosaic.version = 11 : i64} {
  func.func @_din_attention_kernel(%arg0: i32, %arg1: memref<2x8x32xf32, #tpu.memory_space<vmem>>, %arg2: memref<2x32xf32, #tpu.memory_space<vmem>>, %arg3: memref<2x8xf32, #tpu.memory_space<vmem>>, %arg4: memref<2x8xf32, #tpu.memory_space<vmem>>, %arg5: memref<2x8xf32, #tpu.memory_space<vmem>>, %arg6: memref<32x32xf32, #tpu.memory_space<vmem>>, %arg7: memref<1x32xf32, #tpu.memory_space<vmem>>, %arg8: memref<32x64xf32, #tpu.memory_space<vmem>>, %arg9: memref<1x64xf32, #tpu.memory_space<vmem>>, %arg10: memref<32x32xf32, #tpu.memory_space<vmem>>, %arg11: memref<32x32xf32, #tpu.memory_space<vmem>>, %arg12: memref<32x32xf32, #tpu.memory_space<vmem>>, %arg13: memref<1x32xf32, #tpu.memory_space<vmem>>, %arg14: memref<2x32xf32, #tpu.memory_space<vmem>>, %arg15: memref<2x32xf32, #tpu.memory_space<vmem>>) attributes {dimension_semantics = [#tpu.dimension_semantics<parallel>], iteration_bounds = array<i64: 1>, scalar_prefetch = 0 : i64, scratch_operands = 0 : i64, tpu.core_type = #tpu.core_type<tc>, window_params = [{transform_indices = @transform_0, window_bounds = array<i64: 2, 8, 32>}, {transform_indices = @transform_1, window_bounds = array<i64: 2, 32>}, {transform_indices = @transform_2, window_bounds = array<i64: 2, 8>}, {transform_indices = @transform_3, window_bounds = array<i64: 2, 8>}, {transform_indices = @transform_4, window_bounds = array<i64: 2, 8>}, {pipeline_mode = #tpu.pipeline_mode<synchronous>, transform_indices = @transform_5, window_bounds = array<i64: 32, 32>}, {pipeline_mode = #tpu.pipeline_mode<synchronous>, transform_indices = @transform_6, window_bounds = array<i64: 1, 32>}, {pipeline_mode = #tpu.pipeline_mode<synchronous>, transform_indices = @transform_7, window_bounds = array<i64: 32, 64>}, {pipeline_mode = #tpu.pipeline_mode<synchronous>, transform_indices = @transform_8, window_bounds = array<i64: 1, 64>}, {pipeline_mode = #tpu.pipeline_mode<synchronous>, transform_indices = @transform_9, window_bounds = array<i64: 32, 32>}, {pipeline_mode = #tpu.pipeline_mode<synchronous>, transform_indices = @transform_10, window_bounds = array<i64: 32, 32>}, {pipeline_mode = #tpu.pipeline_mode<synchronous>, transform_indices = @transform_11, window_bounds = array<i64: 32, 32>}, {pipeline_mode = #tpu.pipeline_mode<synchronous>, transform_indices = @transform_12, window_bounds = array<i64: 1, 32>}, {transform_indices = @transform_13, window_bounds = array<i64: 2, 32>}, {transform_indices = @transform_14, window_bounds = array<i64: 2, 32>}]} {
    %c0 = arith.constant 0 : index
    %c0_0 = arith.constant 0 : index
    %0 = vector.load %arg2[%c0, %c0_0] : memref<2x32xf32, #tpu.memory_space<vmem>>, vector<2x32xf32>
    %c0_1 = arith.constant 0 : index
    %c0_2 = arith.constant 0 : index
    %1 = vector.load %arg3[%c0_1, %c0_2] : memref<2x8xf32, #tpu.memory_space<vmem>>, vector<2x8xf32>
    %c0_3 = arith.constant 0 : index
    %c0_4 = arith.constant 0 : index
    %2 = vector.load %arg4[%c0_3, %c0_4] : memref<2x8xf32, #tpu.memory_space<vmem>>, vector<2x8xf32>
    %c0_5 = arith.constant 0 : index
    %c0_6 = arith.constant 0 : index
    %3 = vector.load %arg5[%c0_5, %c0_6] : memref<2x8xf32, #tpu.memory_space<vmem>>, vector<2x8xf32>
    %c0_7 = arith.constant 0 : index
    %c0_8 = arith.constant 0 : index
    %c0_9 = arith.constant 0 : index
    %4 = vector.load %arg1[%c0_7, %c0_8, %c0_9] : memref<2x8x32xf32, #tpu.memory_space<vmem>>, vector<2x8x32xf32>
    %5 = vector.shape_cast %4 : vector<2x8x32xf32> to vector<16x32xf32>
    %c0_10 = arith.constant 0 : index
    %c0_11 = arith.constant 0 : index
    %6 = vector.load %arg6[%c0_10, %c0_11] : memref<32x32xf32, #tpu.memory_space<vmem>>, vector<32x32xf32>
    %cst = arith.constant dense<0.000000e+00> : vector<2x32xf32>
    %7 = tpu.matmul %0, %6, %cst {dimension_numbers = #tpu.dot_dimension_numbers<[1], [0], [0], [1], [0, 0, 1, 1], [], []>} : vector<2x32xf32>, vector<32x32xf32>, vector<2x32xf32> -> vector<2x32xf32>
    %c0_12 = arith.constant 0 : index
    %c0_13 = arith.constant 0 : index
    %8 = vector.load %arg7[%c0_12, %c0_13] : memref<1x32xf32, #tpu.memory_space<vmem>>, vector<1x32xf32>
    %9 = vector.broadcast %8 : vector<1x32xf32> to vector<2x32xf32>
    %10 = arith.addf %7, %9 : vector<2x32xf32>
    %c0_14 = arith.constant 0 : index
    %c0_15 = arith.constant 0 : index
    %11 = vector.load %arg8[%c0_14, %c0_15] : memref<32x64xf32, #tpu.memory_space<vmem>>, vector<32x64xf32>
    %cst_16 = arith.constant dense<0.000000e+00> : vector<16x64xf32>
    %12 = tpu.matmul %5, %11, %cst_16 {dimension_numbers = #tpu.dot_dimension_numbers<[1], [0], [0], [1], [0, 0, 1, 1], [], []>} : vector<16x32xf32>, vector<32x64xf32>, vector<16x64xf32> -> vector<16x64xf32>
    %c0_17 = arith.constant 0 : index
    %c0_18 = arith.constant 0 : index
    %13 = vector.load %arg9[%c0_17, %c0_18] : memref<1x64xf32, #tpu.memory_space<vmem>>, vector<1x64xf32>
    %14 = vector.broadcast %13 : vector<1x64xf32> to vector<16x64xf32>
    %15 = arith.addf %12, %14 : vector<16x64xf32>
    %16 = vector.extract_strided_slice %15 {offsets = [0, 0], sizes = [16, 32], strides = [1, 1]} : vector<16x64xf32> to vector<16x32xf32>
    %17 = vector.shape_cast %16 : vector<16x32xf32> to vector<2x8x32xf32>
    %18 = vector.extract_strided_slice %15 {offsets = [0, 32], sizes = [16, 32], strides = [1, 1]} : vector<16x64xf32> to vector<16x32xf32>
    %19 = vector.shape_cast %18 : vector<16x32xf32> to vector<2x8x32xf32>
    %cst_19 = arith.constant dense<0.000000e+00> : vector<2x32xf32>
    %20 = vector.multi_reduction <add>, %17, %cst_19 [1] : vector<2x8x32xf32> to vector<2x32xf32>
    %cst_20 = arith.constant 8.000000e+00 : f32
    %21 = vector.broadcast %cst_20 : f32 to vector<2x32xf32>
    %22 = arith.divf %20, %21 : vector<2x32xf32>
    %c0_21 = arith.constant 0 : index
    %c0_22 = arith.constant 0 : index
    %23 = vector.load %arg10[%c0_21, %c0_22] : memref<32x32xf32, #tpu.memory_space<vmem>>, vector<32x32xf32>
    %cst_23 = arith.constant dense<0.000000e+00> : vector<2x32xf32>
    %24 = tpu.matmul %10, %23, %cst_23 {dimension_numbers = #tpu.dot_dimension_numbers<[1], [0], [0], [1], [0, 0, 1, 1], [], []>} : vector<2x32xf32>, vector<32x32xf32>, vector<2x32xf32> -> vector<2x32xf32>
    %c0_24 = arith.constant 0 : index
    %c0_25 = arith.constant 0 : index
    %25 = vector.load %arg11[%c0_24, %c0_25] : memref<32x32xf32, #tpu.memory_space<vmem>>, vector<32x32xf32>
    %cst_26 = arith.constant dense<0.000000e+00> : vector<2x32xf32>
    %26 = tpu.matmul %22, %25, %cst_26 {dimension_numbers = #tpu.dot_dimension_numbers<[1], [0], [0], [1], [0, 0, 1, 1], [], []>} : vector<2x32xf32>, vector<32x32xf32>, vector<2x32xf32> -> vector<2x32xf32>
    %27 = arith.addf %24, %26 : vector<2x32xf32>
    %28 = arith.mulf %10, %22 : vector<2x32xf32>
    %c0_27 = arith.constant 0 : index
    %c0_28 = arith.constant 0 : index
    %29 = vector.load %arg12[%c0_27, %c0_28] : memref<32x32xf32, #tpu.memory_space<vmem>>, vector<32x32xf32>
    %cst_29 = arith.constant dense<0.000000e+00> : vector<2x32xf32>
    %30 = tpu.matmul %28, %29, %cst_29 {dimension_numbers = #tpu.dot_dimension_numbers<[1], [0], [0], [1], [0, 0, 1, 1], [], []>} : vector<2x32xf32>, vector<32x32xf32>, vector<2x32xf32> -> vector<2x32xf32>
    %31 = arith.addf %27, %30 : vector<2x32xf32>
    %c0_30 = arith.constant 0 : index
    %c0_31 = arith.constant 0 : index
    %32 = vector.load %arg13[%c0_30, %c0_31] : memref<1x32xf32, #tpu.memory_space<vmem>>, vector<1x32xf32>
    %33 = vector.broadcast %32 : vector<1x32xf32> to vector<2x32xf32>
    %34 = arith.addf %31, %33 : vector<2x32xf32>
    %35 = vector.shape_cast %10 : vector<2x32xf32> to vector<2x1x32xf32>
    %36 = vector.broadcast %35 : vector<2x1x32xf32> to vector<2x8x32xf32>
    %37 = arith.mulf %36, %17 : vector<2x8x32xf32>
    %cst_32 = arith.constant dense<0.000000e+00> : vector<2x8xf32>
    %38 = vector.multi_reduction <add>, %37, %cst_32 [2] : vector<2x8x32xf32> to vector<2x8xf32>
    %cst_33 = arith.constant 0.353553385 : f32
    %39 = vector.broadcast %cst_33 : f32 to vector<2x8xf32>
    %40 = arith.mulf %38, %39 : vector<2x8xf32>
    %cst_34 = arith.constant -0.00999999977 : f32
    %41 = vector.broadcast %cst_34 : f32 to vector<2x8xf32>
    %42 = arith.mulf %41, %2 : vector<2x8xf32>
    %43 = math.exp %42 : vector<2x8xf32>
    %44 = arith.mulf %40, %43 : vector<2x8xf32>
    %cst_35 = arith.constant 0.000000e+00 : f32
    %45 = vector.broadcast %cst_35 : f32 to vector<2x8xf32>
    %46 = arith.cmpf oeq, %1, %45 : vector<2x8xf32>
    %cst_36 = arith.constant 0xFF800000 : f32
    %47 = vector.broadcast %cst_36 : f32 to vector<2x8xf32>
    %48 = arith.select %46, %47, %44 : vector<2x8xi1>, vector<2x8xf32>
    %cst_37 = arith.constant dense<0xFF800000> : vector<2xf32>
    %49 = vector.multi_reduction <maximumf>, %48, %cst_37 [1] : vector<2x8xf32> to vector<2xf32>
    %50 = vector.shape_cast %49 : vector<2xf32> to vector<2x1xf32>
    %51 = vector.broadcast %50 : vector<2x1xf32> to vector<2x8xf32>
    %52 = arith.subf %48, %51 : vector<2x8xf32>
    %53 = math.exp %52 : vector<2x8xf32>
    %cst_38 = arith.constant dense<0.000000e+00> : vector<2xf32>
    %54 = vector.multi_reduction <add>, %53, %cst_38 [1] : vector<2x8xf32> to vector<2xf32>
    %55 = vector.shape_cast %54 : vector<2xf32> to vector<2x1xf32>
    %56 = tpu.reciprocal %55 {approx = true} : vector<2x1xf32> -> vector<2x1xf32>
    %57 = vector.broadcast %56 : vector<2x1xf32> to vector<2x8xf32>
    %58 = arith.mulf %53, %57 : vector<2x8xf32>
    %59 = arith.mulf %58, %3 : vector<2x8xf32>
    %60 = vector.shape_cast %59 : vector<2x8xf32> to vector<2x8x1xf32>
    %61 = vector.broadcast %60 : vector<2x8x1xf32> to vector<2x8x32xf32>
    %62 = arith.mulf %61, %19 : vector<2x8x32xf32>
    %cst_39 = arith.constant dense<0.000000e+00> : vector<2x32xf32>
    %63 = vector.multi_reduction <add>, %62, %cst_39 [1] : vector<2x8x32xf32> to vector<2x32xf32>
    %64 = arith.addf %63, %0 : vector<2x32xf32>
    %c0_40 = arith.constant 0 : index
    %c0_41 = arith.constant 0 : index
    %65 = vector.load %arg14[%c0_40, %c0_41] : memref<2x32xf32, #tpu.memory_space<vmem>>, vector<2x32xf32>
    tpu.vector_store %arg14[%c0_40, %c0_41], %64 {strides = array<i32>} : memref<2x32xf32, #tpu.memory_space<vmem>>, vector<2x32xf32>,
    %c0_42 = arith.constant 0 : index
    %c0_43 = arith.constant 0 : index
    %66 = vector.load %arg15[%c0_42, %c0_43] : memref<2x32xf32, #tpu.memory_space<vmem>>, vector<2x32xf32>
    tpu.vector_store %arg15[%c0_42, %c0_43], %34 {strides = array<i32>} : memref<2x32xf32, #tpu.memory_space<vmem>>, vector<2x32xf32>,
    return
  }
  func.func @transform_0(%arg0: i32) -> (i32, i32, i32) {
    %c0_i32 = arith.constant 0 : i32
    %c0_i32_0 = arith.constant 0 : i32
    %c0_i32_1 = arith.constant 0 : i32
    return %arg0, %c0_i32, %c0_i32_0 : i32, i32, i32
  }
  func.func @transform_1(%arg0: i32) -> (i32, i32) {
    %c0_i32 = arith.constant 0 : i32
    %c0_i32_0 = arith.constant 0 : i32
    return %arg0, %c0_i32 : i32, i32
  }
  func.func @transform_2(%arg0: i32) -> (i32, i32) {
    %c0_i32 = arith.constant 0 : i32
    %c0_i32_0 = arith.constant 0 : i32
    return %arg0, %c0_i32 : i32, i32
  }
  func.func @transform_3(%arg0: i32) -> (i32, i32) {
    %c0_i32 = arith.constant 0 : i32
    %c0_i32_0 = arith.constant 0 : i32
    return %arg0, %c0_i32 : i32, i32
  }
  func.func @transform_4(%arg0: i32) -> (i32, i32) {
    %c0_i32 = arith.constant 0 : i32
    %c0_i32_0 = arith.constant 0 : i32
    return %arg0, %c0_i32 : i32, i32
  }
  func.func @transform_5(%arg0: i32) -> (i32, i32) {
    %c0_i32 = arith.constant 0 : i32
    %c0_i32_0 = arith.constant 0 : i32
    %c0_i32_1 = arith.constant 0 : i32
    return %c0_i32, %c0_i32_0 : i32, i32
  }
  func.func @transform_6(%arg0: i32) -> (i32, i32) {
    %c0_i32 = arith.constant 0 : i32
    %c0_i32_0 = arith.constant 0 : i32
    %c0_i32_1 = arith.constant 0 : i32
    return %c0_i32, %c0_i32_0 : i32, i32
  }
  func.func @transform_7(%arg0: i32) -> (i32, i32) {
    %c0_i32 = arith.constant 0 : i32
    %c0_i32_0 = arith.constant 0 : i32
    %c0_i32_1 = arith.constant 0 : i32
    return %c0_i32, %c0_i32_0 : i32, i32
  }
  func.func @transform_8(%arg0: i32) -> (i32, i32) {
    %c0_i32 = arith.constant 0 : i32
    %c0_i32_0 = arith.constant 0 : i32
    %c0_i32_1 = arith.constant 0 : i32
    return %c0_i32, %c0_i32_0 : i32, i32
  }
  func.func @transform_9(%arg0: i32) -> (i32, i32) {
    %c0_i32 = arith.constant 0 : i32
    %c0_i32_0 = arith.constant 0 : i32
    %c0_i32_1 = arith.constant 0 : i32
    return %c0_i32, %c0_i32_0 : i32, i32
  }
  func.func @transform_10(%arg0: i32) -> (i32, i32) {
    %c0_i32 = arith.constant 0 : i32
    %c0_i32_0 = arith.constant 0 : i32
    %c0_i32_1 = arith.constant 0 : i32
    return %c0_i32, %c0_i32_0 : i32, i32
  }
  func.func @transform_11(%arg0: i32) -> (i32, i32) {
    %c0_i32 = arith.constant 0 : i32
    %c0_i32_0 = arith.constant 0 : i32
    %c0_i32_1 = arith.constant 0 : i32
    return %c0_i32, %c0_i32_0 : i32, i32
  }
  func.func @transform_12(%arg0: i32) -> (i32, i32) {
    %c0_i32 = arith.constant 0 : i32
    %c0_i32_0 = arith.constant 0 : i32
    %c0_i32_1 = arith.constant 0 : i32
    return %c0_i32, %c0_i32_0 : i32, i32
  }
  func.func @transform_13(%arg0: i32) -> (i32, i32) {
    %c0_i32 = arith.constant 0 : i32
    %c0_i32_0 = arith.constant 0 : i32
    return %arg0, %c0_i32 : i32, i32
  }
  func.func @transform_14(%arg0: i32) -> (i32, i32) {
    %c0_i32 = arith.constant 0 : i32
    %c0_i32_0 = arith.constant 0 : i32
    return %arg0, %c0_i32 : i32, i32
  }
}

module attributes {stable_mosaic.version = 11 : i64} {
  func.func @_din_attention_kernel(%arg0: i32, %arg1: memref<2x8x32xf32, #tpu.memory_space<vmem>>, %arg2: memref<2x32xf32, #tpu.memory_space<vmem>>, %arg3: memref<2x8xf32, #tpu.memory_space<vmem>>, %arg4: memref<2x8xf32, #tpu.memory_space<vmem>>, %arg5: memref<2x8xf32, #tpu.memory_space<vmem>>, %arg6: memref<32x32xf32, #tpu.memory_space<vmem>>, %arg7: memref<1x32xf32, #tpu.memory_space<vmem>>, %arg8: memref<32x64xf32, #tpu.memory_space<vmem>>, %arg9: memref<1x64xf32, #tpu.memory_space<vmem>>, %arg10: memref<32x32xf32, #tpu.memory_space<vmem>>, %arg11: memref<32x32xf32, #tpu.memory_space<vmem>>, %arg12: memref<32x32xf32, #tpu.memory_space<vmem>>, %arg13: memref<1x32xf32, #tpu.memory_space<vmem>>, %arg14: memref<2x32xf32, #tpu.memory_space<vmem>>, %arg15: memref<2x32xf32, #tpu.memory_space<vmem>>) attributes {dimension_semantics = [#tpu.dimension_semantics<parallel>], iteration_bounds = array<i64: 1>, scalar_prefetch = 0 : i64, scratch_operands = 0 : i64, tpu.core_type = #tpu.core_type<tc>, window_params = [{transform_indices = @transform_0, window_bounds = array<i64: 2, 8, 32>}, {transform_indices = @transform_1, window_bounds = array<i64: 2, 32>}, {transform_indices = @transform_2, window_bounds = array<i64: 2, 8>}, {transform_indices = @transform_3, window_bounds = array<i64: 2, 8>}, {transform_indices = @transform_4, window_bounds = array<i64: 2, 8>}, {pipeline_mode = #tpu.pipeline_mode<synchronous>, transform_indices = @transform_5, window_bounds = array<i64: 32, 32>}, {pipeline_mode = #tpu.pipeline_mode<synchronous>, transform_indices = @transform_6, window_bounds = array<i64: 1, 32>}, {pipeline_mode = #tpu.pipeline_mode<synchronous>, transform_indices = @transform_7, window_bounds = array<i64: 32, 64>}, {pipeline_mode = #tpu.pipeline_mode<synchronous>, transform_indices = @transform_8, window_bounds = array<i64: 1, 64>}, {pipeline_mode = #tpu.pipeline_mode<synchronous>, transform_indices = @transform_9, window_bounds = array<i64: 32, 32>}, {pipeline_mode = #tpu.pipeline_mode<synchronous>, transform_indices = @transform_10, window_bounds = array<i64: 32, 32>}, {pipeline_mode = #tpu.pipeline_mode<synchronous>, transform_indices = @transform_11, window_bounds = array<i64: 32, 32>}, {pipeline_mode = #tpu.pipeline_mode<synchronous>, transform_indices = @transform_12, window_bounds = array<i64: 1, 32>}, {transform_indices = @transform_13, window_bounds = array<i64: 2, 32>}, {transform_indices = @transform_14, window_bounds = array<i64: 2, 32>}]} {
    %c0 = arith.constant 0 : index
    %c0_0 = arith.constant 0 : index
    %0 = vector.load %arg2[%c0, %c0_0] : memref<2x32xf32, #tpu.memory_space<vmem>>, vector<2x32xf32>
    %c0_1 = arith.constant 0 : index
    %c0_2 = arith.constant 0 : index
    %1 = vector.load %arg3[%c0_1, %c0_2] : memref<2x8xf32, #tpu.memory_space<vmem>>, vector<2x8xf32>
    %c0_3 = arith.constant 0 : index
    %c0_4 = arith.constant 0 : index
    %2 = vector.load %arg4[%c0_3, %c0_4] : memref<2x8xf32, #tpu.memory_space<vmem>>, vector<2x8xf32>
    %c0_5 = arith.constant 0 : index
    %c0_6 = arith.constant 0 : index
    %3 = vector.load %arg5[%c0_5, %c0_6] : memref<2x8xf32, #tpu.memory_space<vmem>>, vector<2x8xf32>
    %c0_7 = arith.constant 0 : index
    %c0_8 = arith.constant 0 : index
    %c0_9 = arith.constant 0 : index
    %4 = vector.load %arg1[%c0_7, %c0_8, %c0_9] : memref<2x8x32xf32, #tpu.memory_space<vmem>>, vector<2x8x32xf32>
    %5 = vector.shape_cast %4 : vector<2x8x32xf32> to vector<16x32xf32>
    %c0_10 = arith.constant 0 : index
    %c0_11 = arith.constant 0 : index
    %6 = vector.load %arg6[%c0_10, %c0_11] : memref<32x32xf32, #tpu.memory_space<vmem>>, vector<32x32xf32>
    %cst = arith.constant dense<0.000000e+00> : vector<2x32xf32>
    %7 = tpu.matmul %0, %6, %cst {dimension_numbers = #tpu.dot_dimension_numbers<[1], [0], [0], [1], [0, 0, 1, 1], [], []>} : vector<2x32xf32>, vector<32x32xf32>, vector<2x32xf32> -> vector<2x32xf32>
    %c0_12 = arith.constant 0 : index
    %c0_13 = arith.constant 0 : index
    %8 = vector.load %arg7[%c0_12, %c0_13] : memref<1x32xf32, #tpu.memory_space<vmem>>, vector<1x32xf32>
    %9 = vector.broadcast %8 : vector<1x32xf32> to vector<2x32xf32>
    %10 = arith.addf %7, %9 : vector<2x32xf32>
    %c0_14 = arith.constant 0 : index
    %c0_15 = arith.constant 0 : index
    %11 = vector.load %arg8[%c0_14, %c0_15] : memref<32x64xf32, #tpu.memory_space<vmem>>, vector<32x64xf32>
    %cst_16 = arith.constant dense<0.000000e+00> : vector<16x64xf32>
    %12 = tpu.matmul %5, %11, %cst_16 {dimension_numbers = #tpu.dot_dimension_numbers<[1], [0], [0], [1], [0, 0, 1, 1], [], []>} : vector<16x32xf32>, vector<32x64xf32>, vector<16x64xf32> -> vector<16x64xf32>
    %c0_17 = arith.constant 0 : index
    %c0_18 = arith.constant 0 : index
    %13 = vector.load %arg9[%c0_17, %c0_18] : memref<1x64xf32, #tpu.memory_space<vmem>>, vector<1x64xf32>
    %14 = vector.broadcast %13 : vector<1x64xf32> to vector<16x64xf32>
    %15 = arith.addf %12, %14 : vector<16x64xf32>
    %16 = vector.extract_strided_slice %15 {offsets = [0, 0], sizes = [16, 32], strides = [1, 1]} : vector<16x64xf32> to vector<16x32xf32>
    %17 = vector.shape_cast %16 : vector<16x32xf32> to vector<2x8x32xf32>
    %18 = vector.extract_strided_slice %15 {offsets = [0, 32], sizes = [16, 32], strides = [1, 1]} : vector<16x64xf32> to vector<16x32xf32>
    %19 = vector.shape_cast %18 : vector<16x32xf32> to vector<2x8x32xf32>
    %cst_19 = arith.constant dense<0.000000e+00> : vector<2x32xf32>
    %20 = vector.multi_reduction <add>, %17, %cst_19 [1] : vector<2x8x32xf32> to vector<2x32xf32>
    %cst_20 = arith.constant 8.000000e+00 : f32
    %21 = vector.broadcast %cst_20 : f32 to vector<2x32xf32>
    %22 = arith.divf %20, %21 : vector<2x32xf32>
    %c0_21 = arith.constant 0 : index
    %c0_22 = arith.constant 0 : index
    %23 = vector.load %arg10[%c0_21, %c0_22] : memref<32x32xf32, #tpu.memory_space<vmem>>, vector<32x32xf32>
    %cst_23 = arith.constant dense<0.000000e+00> : vector<2x32xf32>
    %24 = tpu.matmul %10, %23, %cst_23 {dimension_numbers = #tpu.dot_dimension_numbers<[1], [0], [0], [1], [0, 0, 1, 1], [], []>} : vector<2x32xf32>, vector<32x32xf32>, vector<2x32xf32> -> vector<2x32xf32>
    %c0_24 = arith.constant 0 : index
    %c0_25 = arith.constant 0 : index
    %25 = vector.load %arg11[%c0_24, %c0_25] : memref<32x32xf32, #tpu.memory_space<vmem>>, vector<32x32xf32>
    %cst_26 = arith.constant dense<0.000000e+00> : vector<2x32xf32>
    %26 = tpu.matmul %22, %25, %cst_26 {dimension_numbers = #tpu.dot_dimension_numbers<[1], [0], [0], [1], [0, 0, 1, 1], [], []>} : vector<2x32xf32>, vector<32x32xf32>, vector<2x32xf32> -> vector<2x32xf32>
    %27 = arith.addf %24, %26 : vector<2x32xf32>
    %28 = arith.mulf %10, %22 : vector<2x32xf32>
    %c0_27 = arith.constant 0 : index
    %c0_28 = arith.constant 0 : index
    %29 = vector.load %arg12[%c0_27, %c0_28] : memref<32x32xf32, #tpu.memory_space<vmem>>, vector<32x32xf32>
    %cst_29 = arith.constant dense<0.000000e+00> : vector<2x32xf32>
    %30 = tpu.matmul %28, %29, %cst_29 {dimension_numbers = #tpu.dot_dimension_numbers<[1], [0], [0], [1], [0, 0, 1, 1], [], []>} : vector<2x32xf32>, vector<32x32xf32>, vector<2x32xf32> -> vector<2x32xf32>
    %31 = arith.addf %27, %30 : vector<2x32xf32>
    %c0_30 = arith.constant 0 : index
    %c0_31 = arith.constant 0 : index
    %32 = vector.load %arg13[%c0_30, %c0_31] : memref<1x32xf32, #tpu.memory_space<vmem>>, vector<1x32xf32>
    %33 = vector.broadcast %32 : vector<1x32xf32> to vector<2x32xf32>
    %34 = arith.addf %31, %33 : vector<2x32xf32>
    %35 = vector.shape_cast %10 : vector<2x32xf32> to vector<2x1x32xf32>
    %36 = vector.broadcast %35 : vector<2x1x32xf32> to vector<2x8x32xf32>
    %37 = arith.mulf %36, %17 : vector<2x8x32xf32>
    %cst_32 = arith.constant dense<0.000000e+00> : vector<2x8xf32>
    %38 = vector.multi_reduction <add>, %37, %cst_32 [2] : vector<2x8x32xf32> to vector<2x8xf32>
    %cst_33 = arith.constant 0.353553385 : f32
    %39 = vector.broadcast %cst_33 : f32 to vector<2x8xf32>
    %40 = arith.mulf %38, %39 : vector<2x8xf32>
    %cst_34 = arith.constant -0.00999999977 : f32
    %41 = vector.broadcast %cst_34 : f32 to vector<2x8xf32>
    %42 = arith.mulf %41, %2 : vector<2x8xf32>
    %43 = math.exp %42 : vector<2x8xf32>
    %44 = arith.mulf %40, %43 : vector<2x8xf32>
    %cst_35 = arith.constant 0.000000e+00 : f32
    %45 = vector.broadcast %cst_35 : f32 to vector<2x8xf32>
    %46 = arith.cmpf oeq, %1, %45 : vector<2x8xf32>
    %cst_36 = arith.constant 0xFF800000 : f32
    %47 = vector.broadcast %cst_36 : f32 to vector<2x8xf32>
    %48 = arith.select %46, %47, %44 : vector<2x8xi1>, vector<2x8xf32>
    %cst_37 = arith.constant dense<0xFF800000> : vector<2xf32>
    %49 = vector.multi_reduction <maximumf>, %48, %cst_37 [1] : vector<2x8xf32> to vector<2xf32>
    %50 = vector.shape_cast %49 : vector<2xf32> to vector<2x1xf32>
    %51 = vector.broadcast %50 : vector<2x1xf32> to vector<2x8xf32>
    %52 = arith.subf %48, %51 : vector<2x8xf32>
    %53 = math.exp %52 : vector<2x8xf32>
    %cst_38 = arith.constant dense<0.000000e+00> : vector<2xf32>
    %54 = vector.multi_reduction <add>, %53, %cst_38 [1] : vector<2x8xf32> to vector<2xf32>
    %55 = vector.shape_cast %54 : vector<2xf32> to vector<2x1xf32>
    %56 = tpu.reciprocal %55 {approx = true} : vector<2x1xf32> -> vector<2x1xf32>
    %57 = vector.broadcast %56 : vector<2x1xf32> to vector<2x8xf32>
    %58 = arith.mulf %53, %57 : vector<2x8xf32>
    %59 = arith.mulf %58, %3 : vector<2x8xf32>
    %60 = vector.shape_cast %59 : vector<2x8xf32> to vector<2x8x1xf32>
    %61 = vector.broadcast %60 : vector<2x8x1xf32> to vector<2x8x32xf32>
    %62 = arith.mulf %61, %19 : vector<2x8x32xf32>
    %cst_39 = arith.constant dense<0.000000e+00> : vector<2x32xf32>
    %63 = vector.multi_reduction <add>, %62, %cst_39 [1] : vector<2x8x32xf32> to vector<2x32xf32>
    %64 = arith.addf %63, %0 : vector<2x32xf32>
    %c0_40 = arith.constant 0 : index
    %c0_41 = arith.constant 0 : index
    %65 = vector.load %arg14[%c0_40, %c0_41] : memref<2x32xf32, #tpu.memory_space<vmem>>, vector<2x32xf32>
    tpu.vector_store %arg14[%c0_40, %c0_41], %64 {strides = array<i32>} : memref<2x32xf32, #tpu.memory_space<vmem>>, vector<2x32xf32>,
    %c0_42 = arith.constant 0 : index
    %c0_43 = arith.constant 0 : index
    %66 = vector.load %arg15[%c0_42, %c0_43] : memref<2x32xf32, #tpu.memory_space<vmem>>, vector<2x32xf32>
    tpu.vector_store %arg15[%c0_42, %c0_43], %34 {strides = array<i32>} : memref<2x32xf32, #tpu.memory_space<vmem>>, vector<2x32xf32>,
    return
  }
  func.func @transform_0(%arg0: i32) -> (i32, i32, i32) {
    %c0_i32 = arith.constant 0 : i32
    %c0_i32_0 = arith.constant 0 : i32
    %c0_i32_1 = arith.constant 0 : i32
    return %arg0, %c0_i32, %c0_i32_0 : i32, i32, i32
  }
  func.func @transform_1(%arg0: i32) -> (i32, i32) {
    %c0_i32 = arith.constant 0 : i32
    %c0_i32_0 = arith.constant 0 : i32
    return %arg0, %c0_i32 : i32, i32
  }
  func.func @transform_2(%arg0: i32) -> (i32, i32) {
    %c0_i32 = arith.constant 0 : i32
    %c0_i32_0 = arith.constant 0 : i32
    return %arg0, %c0_i32 : i32, i32
  }
  func.func @transform_3(%arg0: i32) -> (i32, i32) {
    %c0_i32 = arith.constant 0 : i32
    %c0_i32_0 = arith.constant 0 : i32
    return %arg0, %c0_i32 : i32, i32
  }
  func.func @transform_4(%arg0: i32) -> (i32, i32) {
    %c0_i32 = arith.constant 0 : i32
    %c0_i32_0 = arith.constant 0 : i32
    return %arg0, %c0_i32 : i32, i32
  }
  func.func @transform_5(%arg0: i32) -> (i32, i32) {
    %c0_i32 = arith.constant 0 : i32
    %c0_i32_0 = arith.constant 0 : i32
    %c0_i32_1 = arith.constant 0 : i32
    return %c0_i32, %c0_i32_0 : i32, i32
  }
  func.func @transform_6(%arg0: i32) -> (i32, i32) {
    %c0_i32 = arith.constant 0 : i32
    %c0_i32_0 = arith.constant 0 : i32
    %c0_i32_1 = arith.constant 0 : i32
    return %c0_i32, %c0_i32_0 : i32, i32
  }
  func.func @transform_7(%arg0: i32) -> (i32, i32) {
    %c0_i32 = arith.constant 0 : i32
    %c0_i32_0 = arith.constant 0 : i32
    %c0_i32_1 = arith.constant 0 : i32
    return %c0_i32, %c0_i32_0 : i32, i32
  }
  func.func @transform_8(%arg0: i32) -> (i32, i32) {
    %c0_i32 = arith.constant 0 : i32
    %c0_i32_0 = arith.constant 0 : i32
    %c0_i32_1 = arith.constant 0 : i32
    return %c0_i32, %c0_i32_0 : i32, i32
  }
  func.func @transform_9(%arg0: i32) -> (i32, i32) {
    %c0_i32 = arith.constant 0 : i32
    %c0_i32_0 = arith.constant 0 : i32
    %c0_i32_1 = arith.constant 0 : i32
    return %c0_i32, %c0_i32_0 : i32, i32
  }
  func.func @transform_10(%arg0: i32) -> (i32, i32) {
    %c0_i32 = arith.constant 0 : i32
    %c0_i32_0 = arith.constant 0 : i32
    %c0_i32_1 = arith.constant 0 : i32
    return %c0_i32, %c0_i32_0 : i32, i32
  }
  func.func @transform_11(%arg0: i32) -> (i32, i32) {
    %c0_i32 = arith.constant 0 : i32
    %c0_i32_0 = arith.constant 0 : i32
    %c0_i32_1 = arith.constant 0 : i32
    return %c0_i32, %c0_i32_0 : i32, i32
  }
  func.func @transform_12(%arg0: i32) -> (i32, i32) {
    %c0_i32 = arith.constant 0 : i32
    %c0_i32_0 = arith.constant 0 : i32
    %c0_i32_1 = arith.constant 0 : i32
    return %c0_i32, %c0_i32_0 : i32, i32
  }
  func.func @transform_13(%arg0: i32) -> (i32, i32) {
    %c0_i32 = arith.constant 0 : i32
    %c0_i32_0 = arith.constant 0 : i32
    return %arg0, %c0_i32 : i32, i32
  }
  func.func @transform_14(%arg0: i32) -> (i32, i32) {
    %c0_i32 = arith.constant 0 : i32
    %c0_i32_0 = arith.constant 0 : i32
    return %arg0, %c0_i32 : i32, i32
  }
}

</mosaic_0001>

<bundles_post_ra>
// kernel: tpu_custom_call.1
= control target key start
LH: loop header
LB: loop body
LE: loop exit
PB: predicated region body
PF: predicated region fallthrough
CT: control target
= control target key end

     0   :  { %20 = vsyncpa [#allocation3], 0  ;;  %s1301_s0 = inlined_call_operand.hbm [shape: f32[2,8,32], index: 0, kind: input, shape index: {}]   ;;  %s1302_s1 = inlined_call_operand.hbm [shape: f32[2,32], index: 1, kind: input, shape index: {}]   ;;  %s1303_s2 = inlined_call_operand.vmem [shape: f32[2,8], index: 2, kind: input, shape index: {}]   ;;  %s1304_s3 = inlined_call_operand.vmem [shape: f32[2,8], index: 3, kind: input, shape index: {}]   ;;  %s1305_s4 = inlined_call_operand.vmem [shape: f32[2,8], index: 4, kind: input, shape index: {}]   ;;  %s1306_s5 = inlined_call_operand.hbm [shape: f32[32,32], index: 5, kind: input, shape index: {}]   ;;  %s1307_s6 = inlined_call_operand.vmem [shape: f32[1,32], index: 6, kind: input, shape index: {}]   ;;  %s1308_s7 = inlined_call_operand.hbm [shape: f32[32,64], index: 7, kind: input, shape index: {}]   ;;  %s1309_s8 = inlined_call_operand.vmem [shape: f32[1,64], index: 8, kind: input, shape index: {}]   ;;  %s1310_s9 = inlined_call_operand.hbm [shape: f32[32,32], index: 9, kind: input, shape index: {}]   ;;  %s1311_s10 = inlined_call_operand.hbm [shape: f32[32,32], index: 10, kind: input, shape index: {}]   ;;  %s1312_s11 = inlined_call_operand.hbm [shape: f32[32,32], index: 11, kind: input, shape index: {}]   ;;  %s1313_s12 = inlined_call_operand.vmem [shape: f32[1,32], index: 12, kind: input, shape index: {}]   ;;  %s1314_s13 = inlined_call_operand.hbm [shape: f32[2,32], index: 13, kind: output, shape index: {0}]   ;;  %s1315_s14 = inlined_call_operand.hbm [shape: f32[2,32], index: 14, kind: output, shape index: {1}]  }
   0x1   :  { %21 = vsyncpa [#allocation6], 0 }
   0x2   :  { %22 = vsyncpa [#allocation9], 0 }
   0x3   :  { %23 = vsyncpa [#allocation12], 0 }
   0x4   :  { %24 = vsyncpa [#allocation4], 0 }
   0x5   :  { %25 = vsyncpa [#allocation16], 0  ;;  %s1074_s29 = smov [#allocation5]  }
   0x6   :  { %s44_s30 = sshll.u32 %s1074_s29, 4  ;;  %s45_s30 = int_to_ptr.vmem [resolvable:$true] %s44_s30 }
   0x7   :  { %s890_s15 = scalar_lea.vmem %s45_s30, 32  ;;  %p895_p1 = scmp.lt.s32.totalorder %s45_s30, %s45_s30 }
   0x8   :  { %p891_p0 = scmp.ne.s32.totalorder %s45_s30, %s890_s15  ;;  %p896_p2 = scmp.lt.s32.totalorder %s890_s15, %s890_s15 }
   0xa   :  { %p897_p3 = por %p896_p2, %p895_p1 }
   0xc   :  { %p898_p4 = pnand %p897_p3, %p891_p0 }
   0xe   :  { %901 = shalt.err (!%p898_p4)
}
   0xf   :  { %47 = dma.hbm_to_vmem [thread:$0]  %s1302_s1, 32, %s45_s30, [#allocation6]  }
  0x10   :  { %s1075_s18 = smov [#allocation8]   ;;  %s1076_s20 = smov [#allocation11]  }
  0x11   :  { %s73_s19 = sshll.u32 %s1075_s18, 4  ;;  %s99_s21 = sshll.u32 %s1076_s20, 4  ;;  %s74_s19 = int_to_ptr.vmem [resolvable:$true] %s73_s19  ;;  %s100_s21 = int_to_ptr.vmem [resolvable:$true] %s99_s21 }
  0x12   :  { %s910_s22 = scalar_lea.vmem %s74_s19, 512  ;;  %p915_p6 = scmp.lt.s32.totalorder %s74_s19, %s74_s19 }
  0x13   :  { %p911_p5 = scmp.ne.s32.totalorder %s74_s19, %s910_s22  ;;  %p916_p7 = scmp.lt.s32.totalorder %s910_s22, %s910_s22 }
  0x15   :  { %p917_p8 = por %p916_p7, %p915_p6 }
  0x17   :  { %p918_p9 = pnand %p917_p8, %p911_p5 }
  0x19   :  { %921 = shalt.err (!%p918_p9)
}
  0x1a   :  { %s1077_s23 = smov 128   ;;  %s1078_s24 = smov 8  }
  0x1b   :  { %79 = dma.hbm_to_vmem [thread:$0]  %s1308_s7, 512, %s74_s19, [#allocation9], %s1077_s23, %s1077_s23, %s1078_s24  }
  0x1c   :  { %s930_s1 = scalar_lea.vmem %s100_s21, 512  ;;  %p935_p11 = scmp.lt.s32.totalorder %s100_s21, %s100_s21 }
  0x1d   :  { %p931_p10 = scmp.ne.s32.totalorder %s100_s21, %s930_s1  ;;  %p936_p12 = scmp.lt.s32.totalorder %s930_s1, %s930_s1 }
  0x1f   :  { %p937_p13 = por %p936_p12, %p935_p11 }
  0x21   :  { %p938_p0 = pnand %p937_p13, %p931_p10 }
  0x23   :  { %941 = shalt.err (!%p938_p0)
}
  0x24   :  { %105 = dma.hbm_to_vmem [thread:$0]  %s1311_s10, 512, %s100_s21, [#allocation12], %s1077_s23, %s1077_s23, %s1078_s24  }
  0x25   :  { %s1079_s29 = smov [#allocation2]   ;;  %s1080_s15 = smov [#allocation7]  }
  0x26   :  { %s31_s30 = sshll.u32 %s1079_s29, 4  ;;  %s59_s7 = sshll.u32 %s1080_s15, 4  ;;  %s32_s30 = int_to_ptr.vmem [resolvable:$true] %s31_s30  ;;  %s60_s7 = int_to_ptr.vmem [resolvable:$true] %s59_s7 }
  0x27   :  { %s950_s16 = scalar_lea.vmem %s32_s30, 256  ;;  %p955_p2 = scmp.lt.s32.totalorder %s32_s30, %s32_s30 }
  0x28   :  { %p951_p1 = scmp.ne.s32.totalorder %s32_s30, %s950_s16  ;;  %p956_p3 = scmp.lt.s32.totalorder %s950_s16, %s950_s16 }
  0x2a   :  { %p957_p4 = por %p956_p3, %p955_p2 }
  0x2c   :  { %p958_p5 = pnand %p957_p4, %p951_p1 }
  0x2e   :  { %961 = shalt.err (!%p958_p5)
}
  0x2f   :  { %37 = dma.hbm_to_vmem [thread:$0]  %s1301_s0, 256, %s32_s30, [#allocation3], %s1077_s23, %s1077_s23, %s1078_s24  }
  0x30   :  { %s970_s10 = scalar_lea.vmem %s60_s7, 512  ;;  %p975_p7 = scmp.lt.s32.totalorder %s60_s7, %s60_s7 }
  0x31   :  { %p971_p6 = scmp.ne.s32.totalorder %s60_s7, %s970_s10  ;;  %p976_p8 = scmp.lt.s32.totalorder %s970_s10, %s970_s10 }
  0x33   :  { %p977_p9 = por %p976_p8, %p975_p7 }
  0x35   :  { %p978_p10 = pnand %p977_p9, %p971_p6 }
  0x37   :  { %981 = shalt.err (!%p978_p10)
}
  0x38   :  { %65 = dma.hbm_to_vmem [thread:$0]  %s1306_s5, 512, %s60_s7, [#allocation6], %s1077_s23, %s1077_s23, %s1078_s24  }
  0x39   :  { %s1081_s21 = smov [#allocation10]   ;;  %s1082_s25 = smov [#allocation13]  }
  0x3a   :  { %s87_s22 = sshll.u32 %s1081_s21, 4  ;;  %s111_s0 = sshll.u32 %s1082_s25, 4  ;;  %s88_s22 = int_to_ptr.vmem [resolvable:$true] %s87_s22  ;;  %s112_s0 = int_to_ptr.vmem [resolvable:$true] %s111_s0 }
  0x3b   :  { %s990_s26 = scalar_lea.vmem %s88_s22, 512  ;;  %p995_p12 = scmp.lt.s32.totalorder %s88_s22, %s88_s22 }
  0x3c   :  { %p991_p11 = scmp.ne.s32.totalorder %s88_s22, %s990_s26  ;;  %p996_p13 = scmp.lt.s32.totalorder %s990_s26, %s990_s26 }
  0x3e   :  { %p997_p0 = por %p996_p13, %p995_p12 }
  0x40   :  { %p998_p1 = pnand %p997_p0, %p991_p11 }
  0x42   :  { %1001 = shalt.err (!%p998_p1)
}
  0x43   :  { %93 = dma.hbm_to_vmem [thread:$0]  %s1310_s9, 512, %s88_s22, [#allocation9], %s1077_s23, %s1077_s23, %s1078_s24  }
  0x44   :  { %s1010_s5 = scalar_lea.vmem %s112_s0, 512  ;;  %p1015_p3 = scmp.lt.s32.totalorder %s112_s0, %s112_s0 }
  0x45   :  { %p1011_p2 = scmp.ne.s32.totalorder %s112_s0, %s1010_s5  ;;  %p1016_p4 = scmp.lt.s32.totalorder %s1010_s5, %s1010_s5 }
  0x47   :  { %p1017_p5 = por %p1016_p4, %p1015_p3 }
  0x49   :  { %p1018_p6 = pnand %p1017_p5, %p1011_p2 }
  0x4b   :  { %1021 = shalt.err (!%p1018_p6)
}
  0x4c   :  { %117 = dma.hbm_to_vmem [thread:$0]  %s1312_s11, 512, %s112_s0, [#allocation12], %s1077_s23, %s1077_s23, %s1078_s24  }
  0x4d   :  { %1062 = dma.done.wait [#allocation3], 256  }
  0x4e   :  { %1063 = vsyncadd [#allocation3], 4294967040 }
  0x4f   :  { %1064 = dma.done.wait [#allocation6], 544  }
  0x50   :  { %1065 = vsyncadd [#allocation6], 4294966752 }
  0x51   :  { %1066 = dma.done.wait [#allocation9], 1024  }
  0x52   :  { %1067 = vsyncadd [#allocation9], 4294966272 }
  0x53   :  { %1068 = dma.done.wait [#allocation12], 1024  }
  0x54   :  { %1069 = vsyncadd [#allocation12], 4294966272  ;;  %v1083_v0 = vmov 0.0   ;;  %vm1084_vm0 = vmmov 0   ;;  %v150_v1 = vld [vmem:[#allocation7 + $0x18] sm:$0xff]  ;;  %v149_v3 = vld [vmem:[#allocation7 + $0x10] sm:$0xff]  ;;  %v589_v23 = vlaneseq }
  0x55   :  { %802 = vmatprep.subr.mxu0 %v1083_v0  ;;  %810 = vmatprep.mubr.msk.f32.mxu0 %vm1084_vm0, %v1083_v0  ;;  %v235_v2 = vld [vmem:[#allocation8 + $0x18] sm:$0xff]  ;;  %v234_v4 = vld [vmem:[#allocation8 + $0x10] sm:$0xff]  ;;  %v148_v5 = vld [vmem:[#allocation7 + $0x8] sm:$0xff]  ;;  %vm158_vm1 = vcmask 261120   ;;  %v1085_v30 = vmov 1966171168  }
  0x56   :  { %803 = vmatpush3.msra.mxu0 %v150_v1  ;;  %813 = vmatprep.subr.mxu1 %v235_v2  ;;  %v233_v6 = vld [vmem:[#allocation8 + $0x8] sm:$0xff]  ;;  %v147_v7 = vld [vmem:[#allocation7] sm:$0xff]  ;;  %v1210_v9 = vld [vmem:[#allocation5] sm:$0x3]  ;;  %v1234_v24 = vshrl.u32 %v589_v23, 7  ;;  %v587_v31 = vunpack.c.l.s4 %v1085_v30  ;;  %vm351_vm2 = vcmask 1041409  }
  0x57   :  { %804 = vmatprep.subr.mxu0 %v1083_v0  ;;  %814 = vmatpush3.msra.mxu1 %v235_v2  ;;  %v232_v8 = vld [vmem:[#allocation8] sm:$0xff]  ;;  %v145_v10 = vld [vmem:[#allocation2] sm:$0xff]  ;;  %v146_v11 = vld [vmem:[#allocation2 + $0x8] sm:$0xff]  ;;  %vm732_vm3 = vcmask 254976   ;;  %vm672_vm5 = vcmask 58368   ;;  %s1087_s16 = smov 32  }
  0x58   :  { %805 = vmatpush3.msra.mxu0 %v149_v3  ;;  %815 = vmatprep.subr.mxu1 %v234_v4  ;;  %v344_v12 = vld [vmem:[#allocation10 + $0x18] sm:$0xff]  ;;  %v343_v13 = vld [vmem:[#allocation10 + $0x10] sm:$0xff]  ;;  %v342_v14 = vld [vmem:[#allocation10 + $0x8] sm:$0xff]  ;;  %v1237_v25 = vsub.s32 0, %v1234_v24  ;;  %v641_v26 = vsub.s32 1, %v1234_v24  ;;  %v588_v32 = vunpack.c.0.s8 %v587_v31  ;;  %vm701_vm6 = vcmask 523520  }
  0x59   :  { %806 = vmatprep.subr.mxu0 %v1083_v0  ;;  %816 = vmatpush3.msra.mxu1 %v234_v4  ;;  %v341_v15 = vld [vmem:[#allocation10] sm:$0xff]  ;;  %v348_v16 = vld [vmem:[#allocation11 + $0x18] sm:$0xff]  ;;  %v347_v17 = vld [vmem:[#allocation11 + $0x10] sm:$0xff] }
  0x5a   :  { %807 = vmatpush3.msra.mxu0 %v148_v5  ;;  %817 = vmatprep.subr.mxu1 %v233_v6  ;;  %v346_v18 = vld [vmem:[#allocation11 + $0x8] sm:$0xff]  ;;  %v345_v19 = vld [vmem:[#allocation11] sm:$0xff]  ;;  %v591_v34 = vsub.s32 %v588_v32, %v1234_v24 }
  0x5b   :  { %808 = vmatprep.subr.mxu0 %v1083_v0  ;;  %818 = vmatpush3.msra.mxu1 %v233_v6  ;;  %v143_v20 = vld [vmem:[%s1304_s3] sm:$0x3]  ;;  %v503_v6 = vld [vmem:[#allocation13 + $0x18] sm:$0xff] }
  0x5c   :  { %809 = vmatpush3.msra.mxu0 %v147_v7  ;;  %819 = vmatprep.subr.mxu1 %v232_v8  ;;  %v628_v21 = vmul.f32 -0.01, %v143_v20  ;;  %v767_v33 = vld [vmem:[%s1307_s6] ss:$0 sm:$0xff] }
  0x5d   :  { %811 = vmatmul.mubr.msk.f32.vlgmr.msra.gmra.mxu0 %vm158_vm1, %v1210_v9  ;;  %820 = vmatpush3.msra.mxu1 %v232_v8  ;;  %v769_v36 = vld [vmem:[%s1309_s8] ss:$0 sm:$0xff]  ;;  %v502_v8 = vld [vmem:[#allocation13 + $0x10] sm:$0xff] }
  0x5e   :  { %821 = vmatprep.mubr.msk.f32.mxu1 %vm158_vm1, %v145_v10  ;;  %835 = vmatprep.subr.mxu1 %v1083_v0  ;;  %v629_v22 = vmul.f32 1.442695, %v628_v21  ;;  %v501_v10 = vld [vmem:[#allocation13 + $0x8] sm:$0xff] }
  0x5f   :  { %822 = vmatmul.mubr.msk.f32.vlgmr.msra.gmra.mxu1 %vm158_vm1, %v146_v11  ;;  %824 = vmatprep.subr.mxu0 %v1083_v0  ;;  %v1086_v11 = vmov 0  }
  0x60   :  { %836 = vmatpush3.msra.mxu1 %v344_v12  ;;  %843 = vmatprep.mubr.msk.f32.mxu1 %vm1084_vm0, %v1083_v0  ;;  %876 = vpow2.f32 %v629_v22  ;;  %v500_v12 = vld [vmem:[#allocation13] sm:$0xff] }
  0x61   :  { %837 = vmatprep.subr.mxu1 %v1083_v0  ;;  %832 = vmatprep.mubr.msk.f32.mxu0 %vm1084_vm0, %v1083_v0 }
  0x62   :  { %838 = vmatpush3.msra.mxu1 %v343_v13  ;;  %825 = vmatpush3.msra.mxu0 %v348_v16 }
  0x63   :  { %839 = vmatprep.subr.mxu1 %v1083_v0  ;;  %826 = vmatprep.subr.mxu0 %v1083_v0 }
  0x64   :  { %840 = vmatpush3.msra.mxu1 %v342_v14  ;;  %827 = vmatpush3.msra.mxu0 %v347_v17 }
  0x65   :  { %841 = vmatprep.subr.mxu1 %v1083_v0  ;;  %828 = vmatprep.subr.mxu0 %v1083_v0 }
  0x66   :  { %842 = vmatpush3.msra.mxu1 %v341_v15  ;;  %829 = vmatpush3.msra.mxu0 %v346_v18 }
  0x67   :  { %830 = vmatprep.subr.mxu0 %v1083_v0  ;;  %874 = vset.pattern.permute.xlu0 %v1086_v11 }
  0x68   :  { %831 = vmatpush3.msra.mxu0 %v345_v19  ;;  %875 = vset.pattern.permute.xlu1 %v1086_v11 }
  0x69   :  { %846 = vmatprep.subr.mxu0 %v1083_v0 }
  0x6d   :  { %v877_v27 = vpop.eup %876 }
  0x6e   :  { %v635_v28 = vrot.slane %v877_v27, %v1237_v25  ;;  %v642_v29 = vrot.slane %v877_v27, %v641_v26 }
  0x70   :  { %637 = vbcast.lane.b32.xlu1 %v635_v28, 256 }
  0x74   :  { %644 = vbcast.lane.b32.xlu1 %v642_v29, 256 }
  0xe2   :  { %v638_v14 = vpop.permute.xlu1 %637 }
  0xe6   :  { %v645_v19 = vpop.permute.xlu1 %644 }
 0x11d   :  { %v228_v35 = vpop.f32.mrf.mxu0 }
 0x11e   :  { %v229_v37 = vadd.f32 %v767_v33, %v228_v35  ;;  %v660_v35 = vand.u32 127, %v589_v23 }
 0x11f   :  { %v823_v38 = vpop.f32.mrf.mxu1  ;;  %v812_v39 = vpop.f32.mrf.mxu0 }
 0x120   :  { %v592_v40 = vrot.slane %v229_v37, %v591_v34  ;;  %v1250_v41 = vadd.f32 %v823_v38, %v769_v36  ;;  %844 = vmatmul.mubr.msk.f32.vlgmr.msra.gmra.mxu1 %vm158_vm1, %v229_v37  ;;  %v142_v38 = vld [vmem:[%s1303_s2] sm:$0x3] }
 0x121   :  { %v315_v42 = vpop.f32.mrf.mxu1  ;;  %vm650_vm4 = vcmp.eq.f32.partialorder %v142_v38, 0.0 }
 0x122   :  { %v593_v43 = vcombine.high %v592_v40, %v592_v40  ;;  %v331_v44 = vsel %vm158_vm1, %v1250_v41, 0.0  ;;  %v1255_v45 = vadd.f32 %v769_v36, %v315_v42  ;;  %v600_v46 = vrot.slane %v592_v40, %v591_v34 }
 0x123   :  { %v332_v47 = vrot.slane %v331_v44, 4  ;;  %v663_v36 = vsub.s32 %v660_v35, %v1234_v24 }
 0x124   :  { %v324_v48 = vsel %vm158_vm1, %v1255_v45, 0.0  ;;  %v611_v49 = vrot.slane %v600_v46, %v1237_v25  ;;  %v607_v50 = vrot.slane %v593_v43, %v591_v34 }
 0x125   :  { %v333_v51 = vadd.f32 %v332_v47, %v331_v44  ;;  %v325_v52 = vrot.slane %v324_v48, 4 }
 0x126   :  { %v618_v53 = vmul.f32 %v611_v49, %v1255_v45  ;;  %v615_v54 = vrot.slane %v607_v50, %v1237_v25 }
 0x127   :  { %v334_v55 = vrot.slane %v333_v51, 2  ;;  %v326_v56 = vadd.f32 %v325_v52, %v324_v48 }
 0x128   :  { %v620_v57 = vsel %vm158_vm1, %v618_v53, 0.0  ;;  %v619_v58 = vmul.f32 %v615_v54, %v1250_v41  ;;  %v144_v53 = vld [vmem:[%s1305_s4] sm:$0x3]  ;;  %s1088_s4 = smov [#allocation15]  }
 0x129   :  { %v335_v59 = vadd.f32 %v334_v55, %v333_v51  ;;  %v327_v60 = vrot.slane %v326_v56, 2  ;;  %621 = vadd.xlane.f32.xlu0 %v620_v57  ;;  %s751_s17 = sshll.u32 %s1088_s4, 4  ;;  %s752_s17 = int_to_ptr.vmem [resolvable:$true] %s751_s17 }
 0x12a   :  { %v623_v63 = vsel %vm158_vm1, %v619_v58, 0.0  ;;  %v716_v58 = vrot.slane %v1210_v9, 1  ;;  %s1022_s18 = scalar_lea.vmem %s752_s17, 32  ;;  %p1027_p8 = scmp.lt.s32.totalorder %s752_s17, %s752_s17 }
 0x12b   :  { %v336_v61 = vrot.slane %v335_v59, 1  ;;  %v328_v62 = vadd.f32 %v327_v60, %v326_v56  ;;  %p1023_p7 = scmp.ne.s32.totalorder %s752_s17, %s1022_s18  ;;  %p1028_p9 = scmp.lt.s32.totalorder %s1022_s18, %s1022_s18 }
 0x12d   :  { %v337_v1 = vadd.f32 %v336_v61, %v335_v59  ;;  %v329_v2 = vrot.slane %v328_v62, 1  ;;  %624 = vadd.xlane.f32.xlu0 %v623_v63  ;;  %p1029_p10 = por %p1028_p9, %p1027_p8 }
 0x12f   :  { %v330_v3 = vadd.f32 %v329_v2, %v328_v62  ;;  %v340_v5 = vmul.f32 0.125, %v337_v1  ;;  %p1030_p11 = pnand %p1029_p10, %p1023_p7 }
 0x131   :  { %v339_v4 = vmul.f32 0.125, %v330_v3 }
 0x133   :  { %v352_v7 = vsel %vm351_vm2, %v340_v5, %v339_v4 }
 0x134   :  { %833 = vmatmul.mubr.msk.f32.vlgmr.msra.gmra.mxu0 %vm158_vm1, %v352_v7  ;;  %v499_v13 = vmul.f32 %v352_v7, %v229_v37 }
 0x135   :  { %847 = vmatpush3.msra.mxu0 %v503_v6  ;;  %854 = vmatprep.mubr.msk.f32.mxu0 %vm1084_vm0, %v1083_v0 }
 0x136   :  { %848 = vmatprep.subr.mxu0 %v1083_v0 }
 0x137   :  { %849 = vmatpush3.msra.mxu0 %v502_v8 }
 0x138   :  { %850 = vmatprep.subr.mxu0 %v1083_v0 }
 0x139   :  { %851 = vmatpush3.msra.mxu0 %v501_v10 }
 0x13a   :  { %852 = vmatprep.subr.mxu0 %v1083_v0  ;;  %v775_v0 = vld [vmem:[%s1313_s12] ss:$0 sm:$0xff] }
 0x13b   :  { %853 = vmatpush3.msra.mxu0 %v500_v12 }
 0x13c   :  { %855 = vmatmul.mubr.msk.f32.vlgmr.msra.gmra.mxu0 %vm158_vm1, %v499_v13 }
 0x1b2   :  { %v622_v15 = vpop.xlane.xlu0 %621 }
 0x1b3   :  { %v626_v16 = vmul.f32 0.35355338, %v622_v15 }
 0x1b5   :  { %v648_v17 = vmul.f32 %v638_v14, %v626_v16 }
 0x1b6   :  { %v625_v18 = vpop.xlane.xlu0 %624 }
 0x1b7   :  { %v627_v20 = vmul.f32 0.35355338, %v625_v18  ;;  %654 = vperm.xlu0 %874, %v648_v17  }
 0x1b9   :  { %v649_v21 = vmul.f32 %v645_v19, %v627_v20 }
 0x1bb   :  { %657 = vperm.xlu1 %875, %v649_v21  }
 0x1e0   :  { %v494_v22 = vpop.f32.mrf.mxu1 }
 0x1e2   :  { %v845_v27 = vpop.f32.mrf.mxu1 }
 0x1f4   :  { %v421_v28 = vpop.f32.mrf.mxu0 }
 0x1f5   :  { %v495_v30 = vadd.f32 %v494_v22, %v421_v28 }
 0x1f6   :  { %v834_v29 = vpop.f32.mrf.mxu0 }
 0x1fc   :  { %v573_v31 = vpop.f32.mrf.mxu0 }
 0x1fd   :  { %v577_v32 = vadd.f32 %v573_v31, %v495_v30 }
 0x1fe   :  { %v856_v33 = vpop.f32.mrf.mxu0 }
 0x1ff   :  { %v585_v34 = vadd.f32 %v775_v0, %v577_v32 }
 0x201   :  { %734 = vst.msk [vmem:[#allocation15] sm:$0x3] %vm732_vm3, %v585_v34 }
 0x232   :  { %v655_v37 = vpop.permute.xlu0 %654 }
 0x233   :  { %v664_v40 = vrot.slane %v655_v37, %v663_v36 }
 0x236   :  { %v658_v39 = vpop.permute.xlu1 %657 }
 0x237   :  { %v668_v42 = vrot.slane %v658_v39, %v663_v36 }
 0x239   :  { %v669_v43 = vsel %vm351_vm2, %v668_v42, %v664_v40 }
 0x23a   :  { %v671_v44 = vsel %vm650_vm4, -inf, %v669_v43 }
 0x23b   :  { %v673_v46 = vsel %vm672_vm5, %v671_v44, -inf }
 0x23c   :  { %674 = vmax.xlane.f32.xlu1 %v673_v46 }
 0x2c5   :  { %v675_v47 = vpop.xlane.xlu1 %674 }
 0x2c6   :  { %v676_v48 = vsub.f32 %v671_v44, %v675_v47 }
 0x2c8   :  { %v677_v23 = vmul.f32 1.442695, %v676_v48 }
 0x2ca   :  { %878 = vpow2.f32 %v677_v23 }
 0x2d7   :  { %v879_v49 = vpop.eup %878 }
 0x2d8   :  { %v679_v50 = vsel %vm672_vm5, %v879_v49, 0.0 }
 0x2d9   :  { %680 = vadd.xlane.f32.xlu1 %v679_v50 }
 0x362   :  { %v681_v51 = vpop.xlane.xlu1 %680 }
 0x363   :  { %880 = vrcp.f32 %v681_v51 }
 0x370   :  { %v881_v52 = vpop.eup %880 }
 0x371   :  { %v683_v54 = vmul.f32 %v881_v52, %v879_v49 }
 0x373   :  { %v684_v55 = vmul.f32 %v683_v54, %v144_v53 }
 0x375   :  { %v695_v56 = vrot.slane %v684_v55, %v641_v26  ;;  %v688_v57 = vrot.slane %v684_v55, %v1237_v25 }
 0x377   :  { %697 = vbcast.lane.b32.xlu0 %v695_v56, 256  ;;  %690 = vbcast.lane.b32.xlu1 %v688_v57, 256 }
 0x37b   :  { %719 = vrot.lane.b32.xlu0 %v716_v58, %s1087_s16 }
 0x37f   :  { %717 = vrot.lane.b32.xlu0 %v1210_v9, %s1087_s16 }
 0x3e9   :  { %v698_v59 = vpop.permute.xlu0 %697  ;;  %v691_v60 = vpop.permute.xlu1 %690 }
 0x3ea   :  { %v700_v61 = vmul.f32 %v698_v59, %v1250_v41  ;;  %v699_v62 = vmul.f32 %v691_v60, %v1255_v45 }
 0x3ec   :  { %v709_v63 = vsel %vm701_vm6, %v700_v61, 0.0  ;;  %v702_v24 = vsel %vm701_vm6, %v699_v62, 0.0 }
 0x3ed   :  { %v710_v26 = vrot.slane %v709_v63, 4  ;;  %v703_v1 = vrot.slane %v702_v24, 4  ;;  %v720_v5 = vpop.permute.xlu0 %719 }
 0x3ef   :  { %v711_v25 = vadd.f32 %v710_v26, %v709_v63  ;;  %v704_v2 = vadd.f32 %v703_v1, %v702_v24 }
 0x3f1   :  { %v712_v3 = vrot.slane %v711_v25, 2  ;;  %v705_v4 = vrot.slane %v704_v2, 2 }
 0x3f3   :  { %v713_v6 = vadd.f32 %v712_v3, %v711_v25  ;;  %v706_v9 = vadd.f32 %v705_v4, %v704_v2 }
 0x3f4   :  { %1033 = shalt.err (!%p1030_p11)
}
 0x3f5   :  { %754 = dma.vmem_to_hbm [thread:$0]  %s752_s17, 32, %s1315_s14, [#allocation16]   ;;  %v714_v41 = vrot.slane %v713_v6, 1  ;;  %v707_v45 = vrot.slane %v706_v9, 1  ;;  %v718_v10 = vpop.permute.xlu0 %717 }
 0x3f6   :  { %s1089_s20 = smov 96   ;;  %s1090_s21 = smov [#allocation14]  }
 0x3f7   :  { %v715_v7 = vadd.f32 %v714_v41, %v713_v6  ;;  %v708_v8 = vadd.f32 %v707_v45, %v706_v9  ;;  %s741_s22 = sshll.u32 %s1090_s21, 4  ;;  %s742_s22 = int_to_ptr.vmem [resolvable:$true] %s741_s22 }
 0x3f8   :  { %s1042_s25 = scalar_lea.vmem %s742_s22, 32  ;;  %p1047_p13 = scmp.lt.s32.totalorder %s742_s22, %s742_s22 }
 0x3f9   :  { %v724_v11 = vadd.f32 %v720_v5, %v715_v7  ;;  %v723_v13 = vadd.f32 %v718_v10, %v708_v8  ;;  %p1043_p12 = scmp.ne.s32.totalorder %s742_s22, %s1042_s25  ;;  %p1048_p0 = scmp.lt.s32.totalorder %s1042_s25, %s1042_s25 }
 0x3fb   :  { %v727_v12 = vrot.slane %v724_v11, 7  ;;  %p1049_p1 = por %p1048_p0, %p1047_p13 }
 0x3fd   :  { %v728_v14 = vsel %vm351_vm2, %v727_v12, %v723_v13  ;;  %p1050_p2 = pnand %p1049_p1, %p1043_p12 }
 0x3fe   :  { %729 = vrot.lane.b32.xlu0 %v728_v14, %s1089_s20 }
 0x470   :  { %v730_v15 = vpop.permute.xlu0 %729 }
 0x471   :  { %733 = vst.msk [vmem:[#allocation14] sm:$0x3] %vm732_vm3, %v730_v15 }
 0x472   :  { %1053 = shalt.err (!%p1050_p2)
}
 0x473   :  { %744 = dma.vmem_to_hbm [thread:$0]  %s742_s22, 32, %s1314_s13, [#allocation4]  }
 0x474   :  { %1070 = dma.done.wait [#allocation4], 32  }
 0x475   :  { %1071 = vsyncadd [#allocation4], 4294967264 }
 0x476   :  { %1072 = dma.done.wait [#allocation16], 32  }
 0x477   :  { %1073 = vsyncadd [#allocation16], 4294967264 }
 0x478   :  { %761 = vsyncpa [#allocation3], 1 }
 0x479   :  { %762 = vsyncpa [#allocation6], 1 }
 0x47a   :  { %763 = vsyncpa [#allocation9], 1 }
 0x47b   :  { %764 = vsyncpa [#allocation12], 1 }
 0x47c   :  { %765 = vsyncpa [#allocation4], 1 }
 0x47d   :  { %766 = vsyncpa [#allocation16], 1 }

// kernel: tpu_custom_call.1
= control target key start
LH: loop header
LB: loop body
LE: loop exit
PB: predicated region body
PF: predicated region fallthrough
CT: control target
= control target key end

     0   :  { %20 = vsyncpa [#allocation3], 0  ;;  %s1301_s0 = inlined_call_operand.hbm [shape: f32[2,8,32], index: 0, kind: input, shape index: {}]   ;;  %s1302_s1 = inlined_call_operand.hbm [shape: f32[2,32], index: 1, kind: input, shape index: {}]   ;;  %s1303_s2 = inlined_call_operand.vmem [shape: f32[2,8], index: 2, kind: input, shape index: {}]   ;;  %s1304_s3 = inlined_call_operand.vmem [shape: f32[2,8], index: 3, kind: input, shape index: {}]   ;;  %s1305_s4 = inlined_call_operand.vmem [shape: f32[2,8], index: 4, kind: input, shape index: {}]   ;;  %s1306_s5 = inlined_call_operand.hbm [shape: f32[32,32], index: 5, kind: input, shape index: {}]   ;;  %s1307_s6 = inlined_call_operand.vmem [shape: f32[1,32], index: 6, kind: input, shape index: {}]   ;;  %s1308_s7 = inlined_call_operand.hbm [shape: f32[32,64], index: 7, kind: input, shape index: {}]   ;;  %s1309_s8 = inlined_call_operand.vmem [shape: f32[1,64], index: 8, kind: input, shape index: {}]   ;;  %s1310_s9 = inlined_call_operand.hbm [shape: f32[32,32], index: 9, kind: input, shape index: {}]   ;;  %s1311_s10 = inlined_call_operand.hbm [shape: f32[32,32], index: 10, kind: input, shape index: {}]   ;;  %s1312_s11 = inlined_call_operand.hbm [shape: f32[32,32], index: 11, kind: input, shape index: {}]   ;;  %s1313_s12 = inlined_call_operand.vmem [shape: f32[1,32], index: 12, kind: input, shape index: {}]   ;;  %s1314_s13 = inlined_call_operand.hbm [shape: f32[2,32], index: 13, kind: output, shape index: {0}]   ;;  %s1315_s14 = inlined_call_operand.hbm [shape: f32[2,32], index: 14, kind: output, shape index: {1}]  }
   0x1   :  { %21 = vsyncpa [#allocation6], 0 }
   0x2   :  { %22 = vsyncpa [#allocation9], 0 }
   0x3   :  { %23 = vsyncpa [#allocation12], 0 }
   0x4   :  { %24 = vsyncpa [#allocation4], 0 }
   0x5   :  { %25 = vsyncpa [#allocation16], 0  ;;  %s1074_s29 = smov [#allocation5]  }
   0x6   :  { %s44_s30 = sshll.u32 %s1074_s29, 4  ;;  %s45_s30 = int_to_ptr.vmem [resolvable:$true] %s44_s30 }
   0x7   :  { %s890_s15 = scalar_lea.vmem %s45_s30, 32  ;;  %p895_p1 = scmp.lt.s32.totalorder %s45_s30, %s45_s30 }
   0x8   :  { %p891_p0 = scmp.ne.s32.totalorder %s45_s30, %s890_s15  ;;  %p896_p2 = scmp.lt.s32.totalorder %s890_s15, %s890_s15 }
   0xa   :  { %p897_p3 = por %p896_p2, %p895_p1 }
   0xc   :  { %p898_p4 = pnand %p897_p3, %p891_p0 }
   0xe   :  { %901 = shalt.err (!%p898_p4)
}
   0xf   :  { %47 = dma.hbm_to_vmem [thread:$0]  %s1302_s1, 32, %s45_s30, [#allocation6]  }
  0x10   :  { %s1075_s18 = smov [#allocation8]   ;;  %s1076_s20 = smov [#allocation11]  }
  0x11   :  { %s73_s19 = sshll.u32 %s1075_s18, 4  ;;  %s99_s21 = sshll.u32 %s1076_s20, 4  ;;  %s74_s19 = int_to_ptr.vmem [resolvable:$true] %s73_s19  ;;  %s100_s21 = int_to_ptr.vmem [resolvable:$true] %s99_s21 }
  0x12   :  { %s910_s22 = scalar_lea.vmem %s74_s19, 512  ;;  %p915_p6 = scmp.lt.s32.totalorder %s74_s19, %s74_s19 }
  0x13   :  { %p911_p5 = scmp.ne.s32.totalorder %s74_s19, %s910_s22  ;;  %p916_p7 = scmp.lt.s32.totalorder %s910_s22, %s910_s22 }
  0x15   :  { %p917_p8 = por %p916_p7, %p915_p6 }
  0x17   :  { %p918_p9 = pnand %p917_p8, %p911_p5 }
  0x19   :  { %921 = shalt.err (!%p918_p9)
}
  0x1a   :  { %s1077_s23 = smov 128   ;;  %s1078_s24 = smov 8  }
  0x1b   :  { %79 = dma.hbm_to_vmem [thread:$0]  %s1308_s7, 512, %s74_s19, [#allocation9], %s1077_s23, %s1077_s23, %s1078_s24  }
  0x1c   :  { %s930_s1 = scalar_lea.vmem %s100_s21, 512  ;;  %p935_p11 = scmp.lt.s32.totalorder %s100_s21, %s100_s21 }
  0x1d   :  { %p931_p10 = scmp.ne.s32.totalorder %s100_s21, %s930_s1  ;;  %p936_p12 = scmp.lt.s32.totalorder %s930_s1, %s930_s1 }
  0x1f   :  { %p937_p13 = por %p936_p12, %p935_p11 }
  0x21   :  { %p938_p0 = pnand %p937_p13, %p931_p10 }
  0x23   :  { %941 = shalt.err (!%p938_p0)
}
  0x24   :  { %105 = dma.hbm_to_vmem [thread:$0]  %s1311_s10, 512, %s100_s21, [#allocation12], %s1077_s23, %s1077_s23, %s1078_s24  }
  0x25   :  { %s1079_s29 = smov [#allocation2]   ;;  %s1080_s15 = smov [#allocation7]  }
  0x26   :  { %s31_s30 = sshll.u32 %s1079_s29, 4  ;;  %s59_s7 = sshll.u32 %s1080_s15, 4  ;;  %s32_s30 = int_to_ptr.vmem [resolvable:$true] %s31_s30  ;;  %s60_s7 = int_to_ptr.vmem [resolvable:$true] %s59_s7 }
  0x27   :  { %s950_s16 = scalar_lea.vmem %s32_s30, 256  ;;  %p955_p2 = scmp.lt.s32.totalorder %s32_s30, %s32_s30 }
  0x28   :  { %p951_p1 = scmp.ne.s32.totalorder %s32_s30, %s950_s16  ;;  %p956_p3 = scmp.lt.s32.totalorder %s950_s16, %s950_s16 }
  0x2a   :  { %p957_p4 = por %p956_p3, %p955_p2 }
  0x2c   :  { %p958_p5 = pnand %p957_p4, %p951_p1 }
  0x2e   :  { %961 = shalt.err (!%p958_p5)
}
  0x2f   :  { %37 = dma.hbm_to_vmem [thread:$0]  %s1301_s0, 256, %s32_s30, [#allocation3], %s1077_s23, %s1077_s23, %s1078_s24  }
  0x30   :  { %s970_s10 = scalar_lea.vmem %s60_s7, 512  ;;  %p975_p7 = scmp.lt.s32.totalorder %s60_s7, %s60_s7 }
  0x31   :  { %p971_p6 = scmp.ne.s32.totalorder %s60_s7, %s970_s10  ;;  %p976_p8 = scmp.lt.s32.totalorder %s970_s10, %s970_s10 }
  0x33   :  { %p977_p9 = por %p976_p8, %p975_p7 }
  0x35   :  { %p978_p10 = pnand %p977_p9, %p971_p6 }
  0x37   :  { %981 = shalt.err (!%p978_p10)
}
  0x38   :  { %65 = dma.hbm_to_vmem [thread:$0]  %s1306_s5, 512, %s60_s7, [#allocation6], %s1077_s23, %s1077_s23, %s1078_s24  }
  0x39   :  { %s1081_s21 = smov [#allocation10]   ;;  %s1082_s25 = smov [#allocation13]  }
  0x3a   :  { %s87_s22 = sshll.u32 %s1081_s21, 4  ;;  %s111_s0 = sshll.u32 %s1082_s25, 4  ;;  %s88_s22 = int_to_ptr.vmem [resolvable:$true] %s87_s22  ;;  %s112_s0 = int_to_ptr.vmem [resolvable:$true] %s111_s0 }
  0x3b   :  { %s990_s26 = scalar_lea.vmem %s88_s22, 512  ;;  %p995_p12 = scmp.lt.s32.totalorder %s88_s22, %s88_s22 }
  0x3c   :  { %p991_p11 = scmp.ne.s32.totalorder %s88_s22, %s990_s26  ;;  %p996_p13 = scmp.lt.s32.totalorder %s990_s26, %s990_s26 }
  0x3e   :  { %p997_p0 = por %p996_p13, %p995_p12 }
  0x40   :  { %p998_p1 = pnand %p997_p0, %p991_p11 }
  0x42   :  { %1001 = shalt.err (!%p998_p1)
}
  0x43   :  { %93 = dma.hbm_to_vmem [thread:$0]  %s1310_s9, 512, %s88_s22, [#allocation9], %s1077_s23, %s1077_s23, %s1078_s24  }
  0x44   :  { %s1010_s5 = scalar_lea.vmem %s112_s0, 512  ;;  %p1015_p3 = scmp.lt.s32.totalorder %s112_s0, %s112_s0 }
  0x45   :  { %p1011_p2 = scmp.ne.s32.totalorder %s112_s0, %s1010_s5  ;;  %p1016_p4 = scmp.lt.s32.totalorder %s1010_s5, %s1010_s5 }
  0x47   :  { %p1017_p5 = por %p1016_p4, %p1015_p3 }
  0x49   :  { %p1018_p6 = pnand %p1017_p5, %p1011_p2 }
  0x4b   :  { %1021 = shalt.err (!%p1018_p6)
}
  0x4c   :  { %117 = dma.hbm_to_vmem [thread:$0]  %s1312_s11, 512, %s112_s0, [#allocation12], %s1077_s23, %s1077_s23, %s1078_s24  }
  0x4d   :  { %1062 = dma.done.wait [#allocation3], 256  }
  0x4e   :  { %1063 = vsyncadd [#allocation3], 4294967040 }
  0x4f   :  { %1064 = dma.done.wait [#allocation6], 544  }
  0x50   :  { %1065 = vsyncadd [#allocation6], 4294966752 }
  0x51   :  { %1066 = dma.done.wait [#allocation9], 1024  }
  0x52   :  { %1067 = vsyncadd [#allocation9], 4294966272 }
  0x53   :  { %1068 = dma.done.wait [#allocation12], 1024  }
  0x54   :  { %1069 = vsyncadd [#allocation12], 4294966272  ;;  %v1083_v0 = vmov 0.0   ;;  %vm1084_vm0 = vmmov 0   ;;  %v150_v1 = vld [vmem:[#allocation7 + $0x18] sm:$0xff]  ;;  %v149_v3 = vld [vmem:[#allocation7 + $0x10] sm:$0xff]  ;;  %v589_v23 = vlaneseq }
  0x55   :  { %802 = vmatprep.subr.mxu0 %v1083_v0  ;;  %810 = vmatprep.mubr.msk.f32.mxu0 %vm1084_vm0, %v1083_v0  ;;  %v235_v2 = vld [vmem:[#allocation8 + $0x18] sm:$0xff]  ;;  %v234_v4 = vld [vmem:[#allocation8 + $0x10] sm:$0xff]  ;;  %v148_v5 = vld [vmem:[#allocation7 + $0x8] sm:$0xff]  ;;  %vm158_vm1 = vcmask 261120   ;;  %v1085_v30 = vmov 1966171168  }
  0x56   :  { %803 = vmatpush3.msra.mxu0 %v150_v1  ;;  %813 = vmatprep.subr.mxu1 %v235_v2  ;;  %v233_v6 = vld [vmem:[#allocation8 + $0x8] sm:$0xff]  ;;  %v147_v7 = vld [vmem:[#allocation7] sm:$0xff]  ;;  %v1210_v9 = vld [vmem:[#allocation5] sm:$0x3]  ;;  %v1234_v24 = vshrl.u32 %v589_v23, 7  ;;  %v587_v31 = vunpack.c.l.s4 %v1085_v30  ;;  %vm351_vm2 = vcmask 1041409  }
  0x57   :  { %804 = vmatprep.subr.mxu0 %v1083_v0  ;;  %814 = vmatpush3.msra.mxu1 %v235_v2  ;;  %v232_v8 = vld [vmem:[#allocation8] sm:$0xff]  ;;  %v145_v10 = vld [vmem:[#allocation2] sm:$0xff]  ;;  %v146_v11 = vld [vmem:[#allocation2 + $0x8] sm:$0xff]  ;;  %vm732_vm3 = vcmask 254976   ;;  %vm672_vm5 = vcmask 58368   ;;  %s1087_s16 = smov 32  }
  0x58   :  { %805 = vmatpush3.msra.mxu0 %v149_v3  ;;  %815 = vmatprep.subr.mxu1 %v234_v4  ;;  %v344_v12 = vld [vmem:[#allocation10 + $0x18] sm:$0xff]  ;;  %v343_v13 = vld [vmem:[#allocation10 + $0x10] sm:$0xff]  ;;  %v342_v14 = vld [vmem:[#allocation10 + $0x8] sm:$0xff]  ;;  %v1237_v25 = vsub.s32 0, %v1234_v24  ;;  %v641_v26 = vsub.s32 1, %v1234_v24  ;;  %v588_v32 = vunpack.c.0.s8 %v587_v31  ;;  %vm701_vm6 = vcmask 523520  }
  0x59   :  { %806 = vmatprep.subr.mxu0 %v1083_v0  ;;  %816 = vmatpush3.msra.mxu1 %v234_v4  ;;  %v341_v15 = vld [vmem:[#allocation10] sm:$0xff]  ;;  %v348_v16 = vld [vmem:[#allocation11 + $0x18] sm:$0xff]  ;;  %v347_v17 = vld [vmem:[#allocation11 + $0x10] sm:$0xff] }
  0x5a   :  { %807 = vmatpush3.msra.mxu0 %v148_v5  ;;  %817 = vmatprep.subr.mxu1 %v233_v6  ;;  %v346_v18 = vld [vmem:[#allocation11 + $0x8] sm:$0xff]  ;;  %v345_v19 = vld [vmem:[#allocation11] sm:$0xff]  ;;  %v591_v34 = vsub.s32 %v588_v32, %v1234_v24 }
  0x5b   :  { %808 = vmatprep.subr.mxu0 %v1083_v0  ;;  %818 = vmatpush3.msra.mxu1 %v233_v6  ;;  %v143_v20 = vld [vmem:[%s1304_s3] sm:$0x3]  ;;  %v503_v6 = vld [vmem:[#allocation13 + $0x18] sm:$0xff] }
  0x5c   :  { %809 = vmatpush3.msra.mxu0 %v147_v7  ;;  %819 = vmatprep.subr.mxu1 %v232_v8  ;;  %v628_v21 = vmul.f32 -0.01, %v143_v20  ;;  %v767_v33 = vld [vmem:[%s1307_s6] ss:$0 sm:$0xff] }
  0x5d   :  { %811 = vmatmul.mubr.msk.f32.vlgmr.msra.gmra.mxu0 %vm158_vm1, %v1210_v9  ;;  %820 = vmatpush3.msra.mxu1 %v232_v8  ;;  %v769_v36 = vld [vmem:[%s1309_s8] ss:$0 sm:$0xff]  ;;  %v502_v8 = vld [vmem:[#allocation13 + $0x10] sm:$0xff] }
  0x5e   :  { %821 = vmatprep.mubr.msk.f32.mxu1 %vm158_vm1, %v145_v10  ;;  %835 = vmatprep.subr.mxu1 %v1083_v0  ;;  %v629_v22 = vmul.f32 1.442695, %v628_v21  ;;  %v501_v10 = vld [vmem:[#allocation13 + $0x8] sm:$0xff] }
  0x5f   :  { %822 = vmatmul.mubr.msk.f32.vlgmr.msra.gmra.mxu1 %vm158_vm1, %v146_v11  ;;  %824 = vmatprep.subr.mxu0 %v1083_v0  ;;  %v1086_v11 = vmov 0  }
  0x60   :  { %836 = vmatpush3.msra.mxu1 %v344_v12  ;;  %843 = vmatprep.mubr.msk.f32.mxu1 %vm1084_vm0, %v1083_v0  ;;  %876 = vpow2.f32 %v629_v22  ;;  %v500_v12 = vld [vmem:[#allocation13] sm:$0xff] }
  0x61   :  { %837 = vmatprep.subr.mxu1 %v1083_v0  ;;  %832 = vmatprep.mubr.msk.f32.mxu0 %vm1084_vm0, %v1083_v0 }
  0x62   :  { %838 = vmatpush3.msra.mxu1 %v343_v13  ;;  %825 = vmatpush3.msra.mxu0 %v348_v16 }
  0x63   :  { %839 = vmatprep.subr.mxu1 %v1083_v0  ;;  %826 = vmatprep.subr.mxu0 %v1083_v0 }
  0x64   :  { %840 = vmatpush3.msra.mxu1 %v342_v14  ;;  %827 = vmatpush3.msra.mxu0 %v347_v17 }
  0x65   :  { %841 = vmatprep.subr.mxu1 %v1083_v0  ;;  %828 = vmatprep.subr.mxu0 %v1083_v0 }
  0x66   :  { %842 = vmatpush3.msra.mxu1 %v341_v15  ;;  %829 = vmatpush3.msra.mxu0 %v346_v18 }
  0x67   :  { %830 = vmatprep.subr.mxu0 %v1083_v0  ;;  %874 = vset.pattern.permute.xlu0 %v1086_v11 }
  0x68   :  { %831 = vmatpush3.msra.mxu0 %v345_v19  ;;  %875 = vset.pattern.permute.xlu1 %v1086_v11 }
  0x69   :  { %846 = vmatprep.subr.mxu0 %v1083_v0 }
  0x6d   :  { %v877_v27 = vpop.eup %876 }
  0x6e   :  { %v635_v28 = vrot.slane %v877_v27, %v1237_v25  ;;  %v642_v29 = vrot.slane %v877_v27, %v641_v26 }
  0x70   :  { %637 = vbcast.lane.b32.xlu1 %v635_v28, 256 }
  0x74   :  { %644 = vbcast.lane.b32.xlu1 %v642_v29, 256 }
  0xe2   :  { %v638_v14 = vpop.permute.xlu1 %637 }
  0xe6   :  { %v645_v19 = vpop.permute.xlu1 %644 }
 0x11d   :  { %v228_v35 = vpop.f32.mrf.mxu0 }
 0x11e   :  { %v229_v37 = vadd.f32 %v767_v33, %v228_v35  ;;  %v660_v35 = vand.u32 127, %v589_v23 }
 0x11f   :  { %v823_v38 = vpop.f32.mrf.mxu1  ;;  %v812_v39 = vpop.f32.mrf.mxu0 }
 0x120   :  { %v592_v40 = vrot.slane %v229_v37, %v591_v34  ;;  %v1250_v41 = vadd.f32 %v823_v38, %v769_v36  ;;  %844 = vmatmul.mubr.msk.f32.vlgmr.msra.gmra.mxu1 %vm158_vm1, %v229_v37  ;;  %v142_v38 = vld [vmem:[%s1303_s2] sm:$0x3] }
 0x121   :  { %v315_v42 = vpop.f32.mrf.mxu1  ;;  %vm650_vm4 = vcmp.eq.f32.partialorder %v142_v38, 0.0 }
 0x122   :  { %v593_v43 = vcombine.high %v592_v40, %v592_v40  ;;  %v331_v44 = vsel %vm158_vm1, %v1250_v41, 0.0  ;;  %v1255_v45 = vadd.f32 %v769_v36, %v315_v42  ;;  %v600_v46 = vrot.slane %v592_v40, %v591_v34 }
 0x123   :  { %v332_v47 = vrot.slane %v331_v44, 4  ;;  %v663_v36 = vsub.s32 %v660_v35, %v1234_v24 }
 0x124   :  { %v324_v48 = vsel %vm158_vm1, %v1255_v45, 0.0  ;;  %v611_v49 = vrot.slane %v600_v46, %v1237_v25  ;;  %v607_v50 = vrot.slane %v593_v43, %v591_v34 }
 0x125   :  { %v333_v51 = vadd.f32 %v332_v47, %v331_v44  ;;  %v325_v52 = vrot.slane %v324_v48, 4 }
 0x126   :  { %v618_v53 = vmul.f32 %v611_v49, %v1255_v45  ;;  %v615_v54 = vrot.slane %v607_v50, %v1237_v25 }
 0x127   :  { %v334_v55 = vrot.slane %v333_v51, 2  ;;  %v326_v56 = vadd.f32 %v325_v52, %v324_v48 }
 0x128   :  { %v620_v57 = vsel %vm158_vm1, %v618_v53, 0.0  ;;  %v619_v58 = vmul.f32 %v615_v54, %v1250_v41  ;;  %v144_v53 = vld [vmem:[%s1305_s4] sm:$0x3]  ;;  %s1088_s4 = smov [#allocation15]  }
 0x129   :  { %v335_v59 = vadd.f32 %v334_v55, %v333_v51  ;;  %v327_v60 = vrot.slane %v326_v56, 2  ;;  %621 = vadd.xlane.f32.xlu0 %v620_v57  ;;  %s751_s17 = sshll.u32 %s1088_s4, 4  ;;  %s752_s17 = int_to_ptr.vmem [resolvable:$true] %s751_s17 }
 0x12a   :  { %v623_v63 = vsel %vm158_vm1, %v619_v58, 0.0  ;;  %v716_v58 = vrot.slane %v1210_v9, 1  ;;  %s1022_s18 = scalar_lea.vmem %s752_s17, 32  ;;  %p1027_p8 = scmp.lt.s32.totalorder %s752_s17, %s752_s17 }
 0x12b   :  { %v336_v61 = vrot.slane %v335_v59, 1  ;;  %v328_v62 = vadd.f32 %v327_v60, %v326_v56  ;;  %p1023_p7 = scmp.ne.s32.totalorder %s752_s17, %s1022_s18  ;;  %p1028_p9 = scmp.lt.s32.totalorder %s1022_s18, %s1022_s18 }
 0x12d   :  { %v337_v1 = vadd.f32 %v336_v61, %v335_v59  ;;  %v329_v2 = vrot.slane %v328_v62, 1  ;;  %624 = vadd.xlane.f32.xlu0 %v623_v63  ;;  %p1029_p10 = por %p1028_p9, %p1027_p8 }
 0x12f   :  { %v330_v3 = vadd.f32 %v329_v2, %v328_v62  ;;  %v340_v5 = vmul.f32 0.125, %v337_v1  ;;  %p1030_p11 = pnand %p1029_p10, %p1023_p7 }
 0x131   :  { %v339_v4 = vmul.f32 0.125, %v330_v3 }
 0x133   :  { %v352_v7 = vsel %vm351_vm2, %v340_v5, %v339_v4 }
 0x134   :  { %833 = vmatmul.mubr.msk.f32.vlgmr.msra.gmra.mxu0 %vm158_vm1, %v352_v7  ;;  %v499_v13 = vmul.f32 %v352_v7, %v229_v37 }
 0x135   :  { %847 = vmatpush3.msra.mxu0 %v503_v6  ;;  %854 = vmatprep.mubr.msk.f32.mxu0 %vm1084_vm0, %v1083_v0 }
 0x136   :  { %848 = vmatprep.subr.mxu0 %v1083_v0 }
 0x137   :  { %849 = vmatpush3.msra.mxu0 %v502_v8 }
 0x138   :  { %850 = vmatprep.subr.mxu0 %v1083_v0 }
 0x139   :  { %851 = vmatpush3.msra.mxu0 %v501_v10 }
 0x13a   :  { %852 = vmatprep.subr.mxu0 %v1083_v0  ;;  %v775_v0 = vld [vmem:[%s1313_s12] ss:$0 sm:$0xff] }
 0x13b   :  { %853 = vmatpush3.msra.mxu0 %v500_v12 }
 0x13c   :  { %855 = vmatmul.mubr.msk.f32.vlgmr.msra.gmra.mxu0 %vm158_vm1, %v499_v13 }
 0x1b2   :  { %v622_v15 = vpop.xlane.xlu0 %621 }
 0x1b3   :  { %v626_v16 = vmul.f32 0.35355338, %v622_v15 }
 0x1b5   :  { %v648_v17 = vmul.f32 %v638_v14, %v626_v16 }
 0x1b6   :  { %v625_v18 = vpop.xlane.xlu0 %624 }
 0x1b7   :  { %v627_v20 = vmul.f32 0.35355338, %v625_v18  ;;  %654 = vperm.xlu0 %874, %v648_v17  }
 0x1b9   :  { %v649_v21 = vmul.f32 %v645_v19, %v627_v20 }
 0x1bb   :  { %657 = vperm.xlu1 %875, %v649_v21  }
 0x1e0   :  { %v494_v22 = vpop.f32.mrf.mxu1 }
 0x1e2   :  { %v845_v27 = vpop.f32.mrf.mxu1 }
 0x1f4   :  { %v421_v28 = vpop.f32.mrf.mxu0 }
 0x1f5   :  { %v495_v30 = vadd.f32 %v494_v22, %v421_v28 }
 0x1f6   :  { %v834_v29 = vpop.f32.mrf.mxu0 }
 0x1fc   :  { %v573_v31 = vpop.f32.mrf.mxu0 }
 0x1fd   :  { %v577_v32 = vadd.f32 %v573_v31, %v495_v30 }
 0x1fe   :  { %v856_v33 = vpop.f32.mrf.mxu0 }
 0x1ff   :  { %v585_v34 = vadd.f32 %v775_v0, %v577_v32 }
 0x201   :  { %734 = vst.msk [vmem:[#allocation15] sm:$0x3] %vm732_vm3, %v585_v34 }
 0x232   :  { %v655_v37 = vpop.permute.xlu0 %654 }
 0x233   :  { %v664_v40 = vrot.slane %v655_v37, %v663_v36 }
 0x236   :  { %v658_v39 = vpop.permute.xlu1 %657 }
 0x237   :  { %v668_v42 = vrot.slane %v658_v39, %v663_v36 }
 0x239   :  { %v669_v43 = vsel %vm351_vm2, %v668_v42, %v664_v40 }
 0x23a   :  { %v671_v44 = vsel %vm650_vm4, -inf, %v669_v43 }
 0x23b   :  { %v673_v46 = vsel %vm672_vm5, %v671_v44, -inf }
 0x23c   :  { %674 = vmax.xlane.f32.xlu1 %v673_v46 }
 0x2c5   :  { %v675_v47 = vpop.xlane.xlu1 %674 }
 0x2c6   :  { %v676_v48 = vsub.f32 %v671_v44, %v675_v47 }
 0x2c8   :  { %v677_v23 = vmul.f32 1.442695, %v676_v48 }
 0x2ca   :  { %878 = vpow2.f32 %v677_v23 }
 0x2d7   :  { %v879_v49 = vpop.eup %878 }
 0x2d8   :  { %v679_v50 = vsel %vm672_vm5, %v879_v49, 0.0 }
 0x2d9   :  { %680 = vadd.xlane.f32.xlu1 %v679_v50 }
 0x362   :  { %v681_v51 = vpop.xlane.xlu1 %680 }
 0x363   :  { %880 = vrcp.f32 %v681_v51 }
 0x370   :  { %v881_v52 = vpop.eup %880 }
 0x371   :  { %v683_v54 = vmul.f32 %v881_v52, %v879_v49 }
 0x373   :  { %v684_v55 = vmul.f32 %v683_v54, %v144_v53 }
 0x375   :  { %v695_v56 = vrot.slane %v684_v55, %v641_v26  ;;  %v688_v57 = vrot.slane %v684_v55, %v1237_v25 }
 0x377   :  { %697 = vbcast.lane.b32.xlu0 %v695_v56, 256  ;;  %690 = vbcast.lane.b32.xlu1 %v688_v57, 256 }
 0x37b   :  { %719 = vrot.lane.b32.xlu0 %v716_v58, %s1087_s16 }
 0x37f   :  { %717 = vrot.lane.b32.xlu0 %v1210_v9, %s1087_s16 }
 0x3e9   :  { %v698_v59 = vpop.permute.xlu0 %697  ;;  %v691_v60 = vpop.permute.xlu1 %690 }
 0x3ea   :  { %v700_v61 = vmul.f32 %v698_v59, %v1250_v41  ;;  %v699_v62 = vmul.f32 %v691_v60, %v1255_v45 }
 0x3ec   :  { %v709_v63 = vsel %vm701_vm6, %v700_v61, 0.0  ;;  %v702_v24 = vsel %vm701_vm6, %v699_v62, 0.0 }
 0x3ed   :  { %v710_v26 = vrot.slane %v709_v63, 4  ;;  %v703_v1 = vrot.slane %v702_v24, 4  ;;  %v720_v5 = vpop.permute.xlu0 %719 }
 0x3ef   :  { %v711_v25 = vadd.f32 %v710_v26, %v709_v63  ;;  %v704_v2 = vadd.f32 %v703_v1, %v702_v24 }
 0x3f1   :  { %v712_v3 = vrot.slane %v711_v25, 2  ;;  %v705_v4 = vrot.slane %v704_v2, 2 }
 0x3f3   :  { %v713_v6 = vadd.f32 %v712_v3, %v711_v25  ;;  %v706_v9 = vadd.f32 %v705_v4, %v704_v2 }
 0x3f4   :  { %1033 = shalt.err (!%p1030_p11)
}
 0x3f5   :  { %754 = dma.vmem_to_hbm [thread:$0]  %s752_s17, 32, %s1315_s14, [#allocation16]   ;;  %v714_v41 = vrot.slane %v713_v6, 1  ;;  %v707_v45 = vrot.slane %v706_v9, 1  ;;  %v718_v10 = vpop.permute.xlu0 %717 }
 0x3f6   :  { %s1089_s20 = smov 96   ;;  %s1090_s21 = smov [#allocation14]  }
 0x3f7   :  { %v715_v7 = vadd.f32 %v714_v41, %v713_v6  ;;  %v708_v8 = vadd.f32 %v707_v45, %v706_v9  ;;  %s741_s22 = sshll.u32 %s1090_s21, 4  ;;  %s742_s22 = int_to_ptr.vmem [resolvable:$true] %s741_s22 }
 0x3f8   :  { %s1042_s25 = scalar_lea.vmem %s742_s22, 32  ;;  %p1047_p13 = scmp.lt.s32.totalorder %s742_s22, %s742_s22 }
 0x3f9   :  { %v724_v11 = vadd.f32 %v720_v5, %v715_v7  ;;  %v723_v13 = vadd.f32 %v718_v10, %v708_v8  ;;  %p1043_p12 = scmp.ne.s32.totalorder %s742_s22, %s1042_s25  ;;  %p1048_p0 = scmp.lt.s32.totalorder %s1042_s25, %s1042_s25 }
 0x3fb   :  { %v727_v12 = vrot.slane %v724_v11, 7  ;;  %p1049_p1 = por %p1048_p0, %p1047_p13 }
 0x3fd   :  { %v728_v14 = vsel %vm351_vm2, %v727_v12, %v723_v13  ;;  %p1050_p2 = pnand %p1049_p1, %p1043_p12 }
 0x3fe   :  { %729 = vrot.lane.b32.xlu0 %v728_v14, %s1089_s20 }
 0x470   :  { %v730_v15 = vpop.permute.xlu0 %729 }
 0x471   :  { %733 = vst.msk [vmem:[#allocation14] sm:$0x3] %vm732_vm3, %v730_v15 }
 0x472   :  { %1053 = shalt.err (!%p1050_p2)
}
 0x473   :  { %744 = dma.vmem_to_hbm [thread:$0]  %s742_s22, 32, %s1314_s13, [#allocation4]  }
 0x474   :  { %1070 = dma.done.wait [#allocation4], 32  }
 0x475   :  { %1071 = vsyncadd [#allocation4], 4294967264 }
 0x476   :  { %1072 = dma.done.wait [#allocation16], 32  }
 0x477   :  { %1073 = vsyncadd [#allocation16], 4294967264 }
 0x478   :  { %761 = vsyncpa [#allocation3], 1 }
 0x479   :  { %762 = vsyncpa [#allocation6], 1 }
 0x47a   :  { %763 = vsyncpa [#allocation9], 1 }
 0x47b   :  { %764 = vsyncpa [#allocation12], 1 }
 0x47c   :  { %765 = vsyncpa [#allocation4], 1 }
 0x47d   :  { %766 = vsyncpa [#allocation16], 1 }

</bundles_post_ra>
